<compile_context>
chip_gen: v7x
topology: tpu7x:2x2x1
jax: 0.10.0
libtpu: 0.0.40
codegen_flags: <defaults>
</compile_context>

<pallas_src>
import functools
import math

import jax
import jax.numpy as jnp
from jax.experimental import pallas as pl
from jax.experimental.pallas import tpu as pltpu


LANE = 128                    # lane-dense padding target for feature axes
TM = 256                      # node-row tile ("parallel" grid axis)
TK = 256                      # adj reduction tile ("arbitrary" grid axis)
STREAM_DTYPE = jnp.bfloat16   # HBM-stream dtype for adj / activations / weights


def _round_up(x, m):
    return ((x + m - 1) // m) * m


# ----------------------------- Pallas kernel -----------------------------

def _prop_linear_kernel(adj_ref, z_ref, wt_ref, b_ref, rs_ref, o_ref,
                        acc_ref, *, relu, tk):
    """Fused stage:  out = maybe_relu((adj @ z) @ W^T + rowsum * b).

    Algebraically equal to the PyTorch order maybe_relu(adj @ (z @ W^T + b))
    (rowsum = adj @ 1; adj rows/cols and z rows are zero-padded).  Linear +
    bias + adj-propagate (+ relu) run as one pallas_call with the adj
    reduction K-tiled, z fully VMEM-resident, f32 accumulation in scratch.
    """
    k = pl.program_id(1)

    @pl.when(k == 0)
    def _():
        acc_ref[...] = jnp.zeros_like(acc_ref)

    # z is resident (constant-index block); slice the current K chunk.
    start = pl.multiple_of(k * tk, 128)
    z_k = z_ref[pl.ds(start, tk), :]
    acc_ref[...] += jnp.dot(adj_ref[...], z_k,
                            preferred_element_type=jnp.float32)

    @pl.when(k == pl.num_programs(1) - 1)
    def _():
        # Keep bf16 operands on the MXU fast path; accumulate in f32.
        y = jnp.dot(acc_ref[...].astype(wt_ref.dtype), wt_ref[...],
                    preferred_element_type=jnp.float32)
        y = y + rs_ref[...] * b_ref[...]
        if relu:
            y = jnp.maximum(y, 0.0)
        o_ref[...] = y.astype(o_ref.dtype)


# ----------------------------- kernel wrapper -----------------------------

def pallas_propagate_linear(adj, z, wt, b, rowsum, *, relu=False, tm=TM, tk=TK):
    """adj: [Np, Np] bf16, z: [Np, Cin] bf16, wt: [Cin, Cout] bf16,
    b: [1, Cout] f32, rowsum: [Np, 1] f32 (all padded).

    Returns  maybe_relu(adj @ (z @ wt + b))  as [Np, Cout] in z.dtype.
    """
    n_pad, cin = z.shape
    cout = wt.shape[1]
    assert adj.shape == (n_pad, n_pad)
    assert wt.shape[0] == cin and b.shape == (1, cout)
    assert rowsum.shape == (n_pad, 1)
    assert n_pad % tm == 0 and n_pad % tk == 0
    assert cin % LANE == 0 and cout % LANE == 0

    grid = (n_pad // tm, n_pad // tk)

    sdt = jnp.dtype(z.dtype).itemsize
    bytes_accessed = (adj.size * jnp.dtype(adj.dtype).itemsize
                      + z.size * sdt                       # resident: read once
                      + wt.size * jnp.dtype(wt.dtype).itemsize
                      + b.size * 4 + rowsum.size * 4
                      + n_pad * cout * sdt)
    cost = pl.CostEstimate(
        flops=2 * n_pad * n_pad * cin + 2 * n_pad * cin * cout,
        transcendentals=0,
        bytes_accessed=int(bytes_accessed),
    )

    # Explicit VMEM budget (double-buffered blocks + resident z + f32 acc)
    # with headroom; stays far under v7x's 64 MiB at these tile/size points.
    vmem_bytes = (2 * tm * tk * sdt            # adj stream (double-buffered)
                  + 2 * n_pad * cin * sdt      # resident z
                  + 2 * cin * cout * sdt       # W^T
                  + 2 * cout * 4               # bias
                  + 2 * tm * 4                 # rowsum
                  + 2 * tm * cout * sdt        # output tile
                  + tm * cin * 4)              # f32 accumulator scratch
    vmem_limit = max(32 * 1024 * 1024, int(vmem_bytes * 1.5))

    return pl.pallas_call(
        functools.partial(_prop_linear_kernel, relu=relu, tk=tk),
        out_shape=jax.ShapeDtypeStruct((n_pad, cout), z.dtype),
        grid_spec=pltpu.PrefetchScalarGridSpec(
            num_scalar_prefetch=0,
            grid=grid,
            in_specs=[
                pl.BlockSpec((tm, tk), lambda i, k: (i, k)),       # adj tile
                pl.BlockSpec((n_pad, cin), lambda i, k: (0, 0)),   # z, resident
                pl.BlockSpec((cin, cout), lambda i, k: (0, 0)),    # W^T, resident
                pl.BlockSpec((1, cout), lambda i, k: (0, 0)),      # bias row
                pl.BlockSpec((tm, 1), lambda i, k: (i, 0)),        # adj row-sum
            ],
            out_specs=pl.BlockSpec((tm, cout), lambda i, k: (i, 0)),
            scratch_shapes=[
                pltpu.VMEM((tm, cin), jnp.float32),   # adj @ z accumulator
            ],
        ),
        compiler_params=pltpu.CompilerParams(
            dimension_semantics=("parallel", "arbitrary"),
            vmem_limit_bytes=vmem_limit),
        cost_estimate=cost,
    )(adj, z, wt, b, rowsum)


# ----------------------------- module forward -----------------------------

@functools.partial(jax.jit, static_argnames=("n", "hidden_dim", "output_dim"))
def fast_ppr_gcn_forward(prepared, adj_pad, rowsum, feat_pad,
                         n, hidden_dim, output_dim, query_edges=None):
    # nn.Dropout is identity in eval mode -> omitted.
    # stage 1: h = relu(adj @ (feature @ W1^T + b1))   -- one fused kernel
    h = pallas_propagate_linear(adj_pad, feat_pad,
                                prepared["w1t"], prepared["b1"], rowsum,
                                relu=True)
    if query_edges is None:
        # stage 2 (node): y = adj @ (h @ W2n^T + b2n)  -- one fused kernel
        y = pallas_propagate_linear(adj_pad, h,
                                    prepared["w2nt"], prepared["b2n"], rowsum,
                                    relu=False)
        return y[:n, :output_dim].astype(jnp.float32)
    # stage 2 (edge): z = adj @ (h @ W2e^T + b2e)      -- one fused kernel
    z = pallas_propagate_linear(adj_pad, h,
                                prepared["w2et"], prepared["b2e"], rowsum,
                                relu=False)
    z = z[:n, :hidden_dim].astype(jnp.float32)
    # Tiny edge tail (E-row gather + concat + E x out linear): plain JAX glue
    # per perf review — at this size an extra kernel launch is pure overhead.
    g = jnp.concatenate((z[query_edges[:, 0]], z[query_edges[:, 1]]), axis=-1)
    return g @ prepared["wlt"] + prepared["bl"]


# ----------------------------- one-time glue -----------------------------

def _pad2(a, rows, cols):
    out = jnp.zeros((rows, cols), a.dtype)
    return out.at[:a.shape[0], :a.shape[1]].set(a)


def prepare_params(params):
    """Transpose to [in,out], zero-pad to 128 lanes, cast streams to bf16 — once."""
    w1, b1 = params["w1"], params["b1"]
    w2n, b2n = params["w2_node"], params["b2_node"]
    w2e, b2e = params["w2_edge"], params["b2_edge"]
    feat_dim, hidden_dim = w1.shape[1], w1.shape[0]
    output_dim = w2n.shape[0]
    fp = _round_up(feat_dim, LANE)
    hp = _round_up(hidden_dim, LANE)
    op = _round_up(output_dim, LANE)
    return dict(
        w1t=_pad2(w1.T, fp, hp).astype(STREAM_DTYPE),
        b1=_pad2(b1.reshape(1, -1), 1, hp).astype(jnp.float32),
        w2nt=_pad2(w2n.T, hp, op).astype(STREAM_DTYPE),
        b2n=_pad2(b2n.reshape(1, -1), 1, op).astype(jnp.float32),
        w2et=_pad2(w2e.T, hp, hp).astype(STREAM_DTYPE),
        b2e=_pad2(b2e.reshape(1, -1), 1, hp).astype(jnp.float32),
        wlt=params["w_lin"].T.astype(jnp.float32),
        bl=params["b_lin"].astype(jnp.float32),
    )


def prepare_inputs(adj, feature, tm=TM, tk=TK):
    """Pad node count to lcm(tm, tk) and feature width to 128 lanes; cast the
    big streams to bf16 and precompute the adj row-sum (bias factor) in f32."""
    n = adj.shape[0]
    n_pad = _round_up(n, math.lcm(tm, tk))
    f_pad = _round_up(feature.shape[1], LANE)
    adj_pad_f32 = _pad2(adj.astype(jnp.float32), n_pad, n_pad)
    rowsum = jnp.sum(adj_pad_f32, axis=1, keepdims=True)         # adj @ 1
    adj_pad = adj_pad_f32.astype(STREAM_DTYPE)
    feat_pad = _pad2(feature, n_pad, f_pad).astype(STREAM_DTYPE)
    return adj_pad, rowsum, feat_pad


# ----------------------------- reference (pure JAX) -----------------------------

def reference_forward(params, adj, feature, query_edges=None):
    x = feature @ params["w1"].T + params["b1"]
    x = adj @ x
    x = jnp.maximum(x, 0.0)
    if query_edges is None:
        x = x @ params["w2_node"].T + params["b2_node"]
        return adj @ x
    x = x @ params["w2_edge"].T + params["b2_edge"]
    x = adj @ x
    x = jnp.concatenate((x[query_edges[:, 0]], x[query_edges[:, 1]]), axis=-1)
    return x @ params["w_lin"].T + params["b_lin"]


# ----------------------------- setup helpers -----------------------------

def _init_linear(key, fout, fin):
    # PyTorch nn.Linear default init: U(-1/sqrt(fin), 1/sqrt(fin))
    kw, kb = jax.random.split(key)
    bound = 1.0 / jnp.sqrt(jnp.float32(fin))
    w = jax.random.uniform(kw, (fout, fin), jnp.float32, -bound, bound)
    b = jax.random.uniform(kb, (fout,), jnp.float32, -bound, bound)
    return w, b


def init_params(key, feat_dim, hidden_dim, output_dim):
    k1, k2, k3, k4 = jax.random.split(key, 4)
    w1, b1 = _init_linear(k1, hidden_dim, feat_dim)
    w2n, b2n = _init_linear(k2, output_dim, hidden_dim)
    w2e, b2e = _init_linear(k3, hidden_dim, hidden_dim)
    wl, bl = _init_linear(k4, output_dim, 2 * hidden_dim)
    return dict(w1=w1, b1=b1, w2_node=w2n, b2_node=b2n,
                w2_edge=w2e, b2_edge=b2e, w_lin=wl, b_lin=bl)


def make_adj(key, n):
    # dense random graph with self-loops, row-normalized (PPR-approx style)
    a = (jax.random.uniform(key, (n, n)) < 0.25).astype(jnp.float32)
    a = a + jnp.eye(n, dtype=jnp.float32)
    return a / jnp.sum(a, axis=1, keepdims=True)


# ----------------------------- main -----------------------------

if __name__ == "__main__":
    N, FEAT, HIDDEN, OUT, E = 32, 32, 32, 16, 8
    key = jax.random.PRNGKey(0)
    k_param, k_adj, k_feat, k_edge = jax.random.split(key, 4)

    params = init_params(k_param, FEAT, HIDDEN, OUT)
    adj = make_adj(k_adj, N)
    feature = jax.random.normal(k_feat, (N, FEAT), jnp.float32)
    query_edges = jax.random.randint(k_edge, (E, 2), 0, N, jnp.int32)

    prepared = prepare_params(params)                 # transpose/pad/cast once
    adj_pad, rowsum, feat_pad = prepare_inputs(adj, feature)

    # node branch (query_edges is None)
    y_node = fast_ppr_gcn_forward(prepared, adj_pad, rowsum, feat_pad,
                                  N, HIDDEN, OUT, query_edges=None)
    y_node = jax.block_until_ready(y_node)
    ref_node = reference_forward(params, adj, feature, query_edges=None)

    # edge branch
    y_edge = fast_ppr_gcn_forward(prepared, adj_pad, rowsum, feat_pad,
                                  N, HIDDEN, OUT, query_edges=query_edges)
    y_edge = jax.block_until_ready(y_edge)
    ref_edge = reference_forward(params, adj, feature, query_edges=query_edges)

    assert y_node.shape == (N, OUT)
    assert y_edge.shape == (E, OUT)
    # bf16 streaming loosens agreement with the pure-f32 reference (f32 accum kept).
    assert jnp.allclose(y_node, ref_node, rtol=5e-2, atol=5e-2), \
        float(jnp.max(jnp.abs(y_node - ref_node)))
    assert jnp.allclose(y_edge, ref_edge, rtol=5e-2, atol=5e-2), \
        float(jnp.max(jnp.abs(y_edge - ref_edge)))

    print("KERNEL_OK")
</pallas_src>

<mosaic_0001>
module attributes {stable_mosaic.version = 11 : i64} {
  func.func @_prop_linear_kernel(%arg0: i32, %arg1: i32, %arg2: memref<256x256xbf16, #tpu.memory_space<vmem>>, %arg3: memref<256x128xbf16, #tpu.memory_space<vmem>>, %arg4: memref<128x128xbf16, #tpu.memory_space<vmem>>, %arg5: memref<1x128xf32, #tpu.memory_space<vmem>>, %arg6: memref<256x1xf32, #tpu.memory_space<vmem>>, %arg7: memref<256x128xbf16, #tpu.memory_space<vmem>>, %arg8: memref<256x128xf32, #tpu.memory_space<vmem>>) attributes {dimension_semantics = [#tpu.dimension_semantics<parallel>, #tpu.dimension_semantics<arbitrary>], iteration_bounds = array<i64: 1, 1>, scalar_prefetch = 0 : i64, scratch_operands = 1 : i64, tpu.core_type = #tpu.core_type<tc>, window_params = [{transform_indices = @transform_0, window_bounds = array<i64: 256, 256>}, {pipeline_mode = #tpu.pipeline_mode<synchronous>, transform_indices = @transform_1, window_bounds = array<i64: 256, 128>}, {pipeline_mode = #tpu.pipeline_mode<synchronous>, transform_indices = @transform_2, window_bounds = array<i64: 128, 128>}, {pipeline_mode = #tpu.pipeline_mode<synchronous>, transform_indices = @transform_3, window_bounds = array<i64: 1, 128>}, {transform_indices = @transform_4, window_bounds = array<i64: 256, 1>}, {transform_indices = @transform_5, window_bounds = array<i64: 256, 128>}]} {
    %c0_i32 = arith.constant 0 : i32
    %0 = arith.cmpi eq, %arg1, %c0_i32 : i32
    %1 = arith.extui %0 : i1 to i32
    %c0_i32_0 = arith.constant 0 : i32
    %2 = arith.cmpi ne, %1, %c0_i32_0 : i32
    scf.if %2 {
      %cst_9 = arith.constant 0.000000e+00 : f32
      %15 = vector.broadcast %cst_9 : f32 to vector<256x128xf32>
      %c0_10 = arith.constant 0 : index
      %c0_11 = arith.constant 0 : index
      %16 = vector.load %arg8[%c0_10, %c0_11] : memref<256x128xf32, #tpu.memory_space<vmem>>, vector<256x128xf32>
      tpu.vector_store %arg8[%c0_10, %c0_11], %15 {strides = array<i32>} : memref<256x128xf32, #tpu.memory_space<vmem>>, vector<256x128xf32>,
    } else {
    }
    %c256_i32 = arith.constant 256 : i32
    %3 = arith.muli %arg1, %c256_i32 : i32
    %4 = tpu.assume_multiple %3, 128 : i32
    %5 = arith.index_cast %4 : i32 to index
    %c0 = arith.constant 0 : index
    %6 = vector.load %arg3[%5, %c0] : memref<256x128xbf16, #tpu.memory_space<vmem>>, vector<256x128xbf16>
    %c0_1 = arith.constant 0 : index
    %c0_2 = arith.constant 0 : index
    %7 = vector.load %arg8[%c0_1, %c0_2] : memref<256x128xf32, #tpu.memory_space<vmem>>, vector<256x128xf32>
    %c0_3 = arith.constant 0 : index
    %c0_4 = arith.constant 0 : index
    %8 = vector.load %arg2[%c0_3, %c0_4] : memref<256x256xbf16, #tpu.memory_space<vmem>>, vector<256x256xbf16>
    %cst = arith.constant dense<0.000000e+00> : vector<256x128xf32>
    %9 = tpu.matmul %8, %6, %cst {dimension_numbers = #tpu.dot_dimension_numbers<[1], [0], [0], [1], [0, 0, 1, 1], [], []>} : vector<256x256xbf16>, vector<256x128xbf16>, vector<256x128xf32> -> vector<256x128xf32>
    %10 = arith.addf %7, %9 : vector<256x128xf32>
    %c0_5 = arith.constant 0 : index
    %c0_6 = arith.constant 0 : index
    %11 = vector.load %arg8[%c0_5, %c0_6] : memref<256x128xf32, #tpu.memory_space<vmem>>, vector<256x128xf32>
    tpu.vector_store %arg8[%c0_5, %c0_6], %10 {strides = array<i32>} : memref<256x128xf32, #tpu.memory_space<vmem>>, vector<256x128xf32>,
    %c0_i32_7 = arith.constant 0 : i32
    %12 = arith.cmpi eq, %arg1, %c0_i32_7 : i32
    %13 = arith.extui %12 : i1 to i32
    %c0_i32_8 = arith.constant 0 : i32
    %14 = arith.cmpi ne, %13, %c0_i32_8 : i32
    scf.if %14 {
      %c0_9 = arith.constant 0 : index
      %c0_10 = arith.constant 0 : index
      %15 = vector.load %arg8[%c0_9, %c0_10] : memref<256x128xf32, #tpu.memory_space<vmem>>, vector<256x128xf32>
      %16 = arith.truncf %15 : vector<256x128xf32> to vector<256x128xbf16>
      %c0_11 = arith.constant 0 : index
      %c0_12 = arith.constant 0 : index
      %17 = vector.load %arg4[%c0_11, %c0_12] : memref<128x128xbf16, #tpu.memory_space<vmem>>, vector<128x128xbf16>
      %cst_13 = arith.constant dense<0.000000e+00> : vector<256x128xf32>
      %18 = tpu.matmul %16, %17, %cst_13 {dimension_numbers = #tpu.dot_dimension_numbers<[1], [0], [0], [1], [0, 0, 1, 1], [], []>} : vector<256x128xbf16>, vector<128x128xbf16>, vector<256x128xf32> -> vector<256x128xf32>
      %c0_14 = arith.constant 0 : index
      %c0_15 = arith.constant 0 : index
      %19 = vector.load %arg6[%c0_14, %c0_15] : memref<256x1xf32, #tpu.memory_space<vmem>>, vector<256x1xf32>
      %c0_16 = arith.constant 0 : index
      %c0_17 = arith.constant 0 : index
      %20 = vector.load %arg5[%c0_16, %c0_17] : memref<1x128xf32, #tpu.memory_space<vmem>>, vector<1x128xf32>
      %21 = vector.broadcast %19 : vector<256x1xf32> to vector<256x128xf32>
      %22 = vector.broadcast %20 : vector<1x128xf32> to vector<256x128xf32>
      %23 = arith.mulf %21, %22 : vector<256x128xf32>
      %24 = arith.addf %18, %23 : vector<256x128xf32>
      %cst_18 = arith.constant 0.000000e+00 : f32
      %25 = vector.broadcast %cst_18 : f32 to vector<256x128xf32>
      %26 = arith.maximumf %24, %25 : vector<256x128xf32>
      %27 = arith.truncf %26 : vector<256x128xf32> to vector<256x128xbf16>
      %c0_19 = arith.constant 0 : index
      %c0_20 = arith.constant 0 : index
      %28 = vector.load %arg7[%c0_19, %c0_20] : memref<256x128xbf16, #tpu.memory_space<vmem>>, vector<256x128xbf16>
      tpu.vector_store %arg7[%c0_19, %c0_20], %27 {strides = array<i32>} : memref<256x128xbf16, #tpu.memory_space<vmem>>, vector<256x128xbf16>,
    } else {
    }
    return
  }
  func.func @transform_0(%arg0: i32, %arg1: i32) -> (i32, i32) {
    %c0_i32 = arith.constant 0 : i32
    return %arg0, %arg1 : i32, i32
  }
  func.func @transform_1(%arg0: i32, %arg1: i32) -> (i32, i32) {
    %c0_i32 = arith.constant 0 : i32
    %c0_i32_0 = arith.constant 0 : i32
    %c0_i32_1 = arith.constant 0 : i32
    return %c0_i32, %c0_i32_0 : i32, i32
  }
  func.func @transform_2(%arg0: i32, %arg1: i32) -> (i32, i32) {
    %c0_i32 = arith.constant 0 : i32
    %c0_i32_0 = arith.constant 0 : i32
    %c0_i32_1 = arith.constant 0 : i32
    return %c0_i32, %c0_i32_0 : i32, i32
  }
  func.func @transform_3(%arg0: i32, %arg1: i32) -> (i32, i32) {
    %c0_i32 = arith.constant 0 : i32
    %c0_i32_0 = arith.constant 0 : i32
    %c0_i32_1 = arith.constant 0 : i32
    return %c0_i32, %c0_i32_0 : i32, i32
  }
  func.func @transform_4(%arg0: i32, %arg1: i32) -> (i32, i32) {
    %c0_i32 = arith.constant 0 : i32
    %c0_i32_0 = arith.constant 0 : i32
    return %arg0, %c0_i32 : i32, i32
  }
  func.func @transform_5(%arg0: i32, %arg1: i32) -> (i32, i32) {
    %c0_i32 = arith.constant 0 : i32
    %c0_i32_0 = arith.constant 0 : i32
    return %arg0, %c0_i32 : i32, i32
  }
}

module attributes {stable_mosaic.version = 11 : i64} {
  func.func @_prop_linear_kernel(%arg0: i32, %arg1: i32, %arg2: memref<256x256xbf16, #tpu.memory_space<vmem>>, %arg3: memref<256x128xbf16, #tpu.memory_space<vmem>>, %arg4: memref<128x128xbf16, #tpu.memory_space<vmem>>, %arg5: memref<1x128xf32, #tpu.memory_space<vmem>>, %arg6: memref<256x1xf32, #tpu.memory_space<vmem>>, %arg7: memref<256x128xbf16, #tpu.memory_space<vmem>>, %arg8: memref<256x128xf32, #tpu.memory_space<vmem>>) attributes {dimension_semantics = [#tpu.dimension_semantics<parallel>, #tpu.dimension_semantics<arbitrary>], iteration_bounds = array<i64: 1, 1>, scalar_prefetch = 0 : i64, scratch_operands = 1 : i64, tpu.core_type = #tpu.core_type<tc>, window_params = [{transform_indices = @transform_0, window_bounds = array<i64: 256, 256>}, {pipeline_mode = #tpu.pipeline_mode<synchronous>, transform_indices = @transform_1, window_bounds = array<i64: 256, 128>}, {pipeline_mode = #tpu.pipeline_mode<synchronous>, transform_indices = @transform_2, window_bounds = array<i64: 128, 128>}, {pipeline_mode = #tpu.pipeline_mode<synchronous>, transform_indices = @transform_3, window_bounds = array<i64: 1, 128>}, {transform_indices = @transform_4, window_bounds = array<i64: 256, 1>}, {transform_indices = @transform_5, window_bounds = array<i64: 256, 128>}]} {
    %c0_i32 = arith.constant 0 : i32
    %0 = arith.cmpi eq, %arg1, %c0_i32 : i32
    %1 = arith.extui %0 : i1 to i32
    %c0_i32_0 = arith.constant 0 : i32
    %2 = arith.cmpi ne, %1, %c0_i32_0 : i32
    scf.if %2 {
      %cst_9 = arith.constant 0.000000e+00 : f32
      %15 = vector.broadcast %cst_9 : f32 to vector<256x128xf32>
      %c0_10 = arith.constant 0 : index
      %c0_11 = arith.constant 0 : index
      %16 = vector.load %arg8[%c0_10, %c0_11] : memref<256x128xf32, #tpu.memory_space<vmem>>, vector<256x128xf32>
      tpu.vector_store %arg8[%c0_10, %c0_11], %15 {strides = array<i32>} : memref<256x128xf32, #tpu.memory_space<vmem>>, vector<256x128xf32>,
    } else {
    }
    %c256_i32 = arith.constant 256 : i32
    %3 = arith.muli %arg1, %c256_i32 : i32
    %4 = tpu.assume_multiple %3, 128 : i32
    %5 = arith.index_cast %4 : i32 to index
    %c0 = arith.constant 0 : index
    %6 = vector.load %arg3[%5, %c0] : memref<256x128xbf16, #tpu.memory_space<vmem>>, vector<256x128xbf16>
    %c0_1 = arith.constant 0 : index
    %c0_2 = arith.constant 0 : index
    %7 = vector.load %arg8[%c0_1, %c0_2] : memref<256x128xf32, #tpu.memory_space<vmem>>, vector<256x128xf32>
    %c0_3 = arith.constant 0 : index
    %c0_4 = arith.constant 0 : index
    %8 = vector.load %arg2[%c0_3, %c0_4] : memref<256x256xbf16, #tpu.memory_space<vmem>>, vector<256x256xbf16>
    %cst = arith.constant dense<0.000000e+00> : vector<256x128xf32>
    %9 = tpu.matmul %8, %6, %cst {dimension_numbers = #tpu.dot_dimension_numbers<[1], [0], [0], [1], [0, 0, 1, 1], [], []>} : vector<256x256xbf16>, vector<256x128xbf16>, vector<256x128xf32> -> vector<256x128xf32>
    %10 = arith.addf %7, %9 : vector<256x128xf32>
    %c0_5 = arith.constant 0 : index
    %c0_6 = arith.constant 0 : index
    %11 = vector.load %arg8[%c0_5, %c0_6] : memref<256x128xf32, #tpu.memory_space<vmem>>, vector<256x128xf32>
    tpu.vector_store %arg8[%c0_5, %c0_6], %10 {strides = array<i32>} : memref<256x128xf32, #tpu.memory_space<vmem>>, vector<256x128xf32>,
    %c0_i32_7 = arith.constant 0 : i32
    %12 = arith.cmpi eq, %arg1, %c0_i32_7 : i32
    %13 = arith.extui %12 : i1 to i32
    %c0_i32_8 = arith.constant 0 : i32
    %14 = arith.cmpi ne, %13, %c0_i32_8 : i32
    scf.if %14 {
      %c0_9 = arith.constant 0 : index
      %c0_10 = arith.constant 0 : index
      %15 = vector.load %arg8[%c0_9, %c0_10] : memref<256x128xf32, #tpu.memory_space<vmem>>, vector<256x128xf32>
      %16 = arith.truncf %15 : vector<256x128xf32> to vector<256x128xbf16>
      %c0_11 = arith.constant 0 : index
      %c0_12 = arith.constant 0 : index
      %17 = vector.load %arg4[%c0_11, %c0_12] : memref<128x128xbf16, #tpu.memory_space<vmem>>, vector<128x128xbf16>
      %cst_13 = arith.constant dense<0.000000e+00> : vector<256x128xf32>
      %18 = tpu.matmul %16, %17, %cst_13 {dimension_numbers = #tpu.dot_dimension_numbers<[1], [0], [0], [1], [0, 0, 1, 1], [], []>} : vector<256x128xbf16>, vector<128x128xbf16>, vector<256x128xf32> -> vector<256x128xf32>
      %c0_14 = arith.constant 0 : index
      %c0_15 = arith.constant 0 : index
      %19 = vector.load %arg6[%c0_14, %c0_15] : memref<256x1xf32, #tpu.memory_space<vmem>>, vector<256x1xf32>
      %c0_16 = arith.constant 0 : index
      %c0_17 = arith.constant 0 : index
      %20 = vector.load %arg5[%c0_16, %c0_17] : memref<1x128xf32, #tpu.memory_space<vmem>>, vector<1x128xf32>
      %21 = vector.broadcast %19 : vector<256x1xf32> to vector<256x128xf32>
      %22 = vector.broadcast %20 : vector<1x128xf32> to vector<256x128xf32>
      %23 = arith.mulf %21, %22 : vector<256x128xf32>
      %24 = arith.addf %18, %23 : vector<256x128xf32>
      %25 = arith.truncf %24 : vector<256x128xf32> to vector<256x128xbf16>
      %c0_18 = arith.constant 0 : index
      %c0_19 = arith.constant 0 : index
      %26 = vector.load %arg7[%c0_18, %c0_19] : memref<256x128xbf16, #tpu.memory_space<vmem>>, vector<256x128xbf16>
      tpu.vector_store %arg7[%c0_18, %c0_19], %25 {strides = array<i32>} : memref<256x128xbf16, #tpu.memory_space<vmem>>, vector<256x128xbf16>,
    } else {
    }
    return
  }
  func.func @transform_0(%arg0: i32, %arg1: i32) -> (i32, i32) {
    %c0_i32 = arith.constant 0 : i32
    return %arg0, %arg1 : i32, i32
  }
  func.func @transform_1(%arg0: i32, %arg1: i32) -> (i32, i32) {
    %c0_i32 = arith.constant 0 : i32
    %c0_i32_0 = arith.constant 0 : i32
    %c0_i32_1 = arith.constant 0 : i32
    return %c0_i32, %c0_i32_0 : i32, i32
  }
  func.func @transform_2(%arg0: i32, %arg1: i32) -> (i32, i32) {
    %c0_i32 = arith.constant 0 : i32
    %c0_i32_0 = arith.constant 0 : i32
    %c0_i32_1 = arith.constant 0 : i32
    return %c0_i32, %c0_i32_0 : i32, i32
  }
  func.func @transform_3(%arg0: i32, %arg1: i32) -> (i32, i32) {
    %c0_i32 = arith.constant 0 : i32
    %c0_i32_0 = arith.constant 0 : i32
    %c0_i32_1 = arith.constant 0 : i32
    return %c0_i32, %c0_i32_0 : i32, i32
  }
  func.func @transform_4(%arg0: i32, %arg1: i32) -> (i32, i32) {
    %c0_i32 = arith.constant 0 : i32
    %c0_i32_0 = arith.constant 0 : i32
    return %arg0, %c0_i32 : i32, i32
  }
  func.func @transform_5(%arg0: i32, %arg1: i32) -> (i32, i32) {
    %c0_i32 = arith.constant 0 : i32
    %c0_i32_0 = arith.constant 0 : i32
    return %arg0, %c0_i32 : i32, i32
  }
}

</mosaic_0001>

<bundles_post_ra>
// kernel: fast_ppr_gcn_forward.2
= control target key start
LH: loop header
LB: loop body
LE: loop exit
PB: predicated region body
PF: predicated region fallthrough
CT: control target
= control target key end

     0   :  { %10 = vsyncpa [#allocation4], 0  ;;  %s2289_s0 = inlined_call_operand.vmem [shape: bf16[256,256], index: 0, kind: input, shape index: {}]   ;;  %s2290_s1 = inlined_call_operand.hbm [shape: bf16[256,128], index: 1, kind: input, shape index: {}]   ;;  %s2291_s2 = inlined_call_operand.hbm [shape: bf16[128,128], index: 2, kind: input, shape index: {}]   ;;  %s2292_s3 = inlined_call_operand.vmem [shape: f32[1,128], index: 3, kind: input, shape index: {}]   ;;  %s2293_s4 = inlined_call_operand.vmem [shape: f32[256,1], index: 4, kind: input, shape index: {}]   ;;  %s2294_s5 = inlined_call_operand.vmem [shape: bf16[256,128], index: 5, kind: output, shape index: {}]  }
   0x1   :  { %11 = vsyncpa [#allocation6], 0  ;;  %s1917_s18 = smov [#allocation3]   ;;  %s1869_s22 = scalar_lea.hbm %s2290_s1, 2048 }
   0x2   :  { %s19_s19 = sshll.u32 %s1917_s18, 4  ;;  %p1870_p0 = scmp.ne.s32.totalorder %s2290_s1, %s1869_s22  ;;  %s20_s19 = int_to_ptr.vmem [resolvable:$true] %s19_s19 }
   0x3   :  { %p1873_p1 = scmp.lt.u32.totalorder %s1869_s22, %s2290_s1 }
   0x5   :  { %p1875_p2 = pnand %p1873_p1, %p1870_p0 }
   0x7   :  { %1878 = shalt.err (!%p1875_p2)
}
   0x8   :  { %s1879_s27 = scalar_lea.vmem %s20_s19, 2048  ;;  %p1884_p4 = scmp.lt.s32.totalorder %s20_s19, %s20_s19 }
   0x9   :  { %p1880_p3 = scmp.ne.s32.totalorder %s20_s19, %s1879_s27  ;;  %p1885_p5 = scmp.lt.s32.totalorder %s1879_s27, %s1879_s27 }
   0xb   :  { %p1886_p6 = por %p1885_p5, %p1884_p4 }
   0xd   :  { %p1887_p7 = pnand %p1886_p6, %p1880_p3 }
   0xf   :  { %1890 = shalt.err (!%p1887_p7)
}
  0x10   :  { %s1918_s28 = smov 64   ;;  %s1919_s29 = smov 4  }
  0x11   :  { %25 = dma.hbm_to_vmem [thread:$0]  %s2290_s1, 2048, %s20_s19, [#allocation4], %s1918_s28, %s1918_s28, %s1919_s29  }
  0x12   :  { %s1920_s7 = smov [#allocation5]   ;;  %s1891_s11 = scalar_lea.hbm %s2291_s2, 1024 }
  0x13   :  { %s31_s8 = sshll.u32 %s1920_s7, 4  ;;  %p1892_p8 = scmp.ne.s32.totalorder %s2291_s2, %s1891_s11  ;;  %s32_s8 = int_to_ptr.vmem [resolvable:$true] %s31_s8 }
  0x14   :  { %p1895_p9 = scmp.lt.u32.totalorder %s1891_s11, %s2291_s2 }
  0x16   :  { %p1897_p10 = pnand %p1895_p9, %p1892_p8 }
  0x18   :  { %1900 = shalt.err (!%p1897_p10)
}
  0x19   :  { %s1901_s16 = scalar_lea.vmem %s32_s8, 1024  ;;  %p1906_p12 = scmp.lt.s32.totalorder %s32_s8, %s32_s8 }
  0x1a   :  { %p1902_p11 = scmp.ne.s32.totalorder %s32_s8, %s1901_s16  ;;  %p1907_p13 = scmp.lt.s32.totalorder %s1901_s16, %s1901_s16 }
  0x1c   :  { %p1908_p0 = por %p1907_p13, %p1906_p12 }
  0x1e   :  { %p1909_p1 = pnand %p1908_p0, %p1902_p11 }
  0x20   :  { %1912 = shalt.err (!%p1909_p1)
}
  0x21   :  { %37 = dma.hbm_to_vmem [thread:$0]  %s2291_s2, 1024, %s32_s8, [#allocation6], %s1918_s28, %s1918_s28, %s1919_s29  }
  0x22   :  { %1913 = dma.done.wait [#allocation4], 2048  }
  0x23   :  { %1914 = vsyncadd [#allocation4], 4294965248 }
  0x24   :  { %1915 = dma.done.wait [#allocation6], 1024  }
  0x25   :  { %1916 = vsyncadd [#allocation6], 4294966272  ;;  %v1797_v0 = vld [vmem:[#allocation3 + $0x40] sm:$0xff]   ;;  %v1799_v2 = vld [vmem:[#allocation3 + $0x48] sm:$0xff]   ;;  %v1921_v56 = vmov 0  }
  0x26   :  { %v1798_v1 = vld [vmem:[#allocation3] sm:$0xff]   ;;  %1590 = vmatprep.subr.bf16.mxu0 %v1797_v0  ;;  %1774 = vmatprep.subr.bf16.mxu1 %v1797_v0  ;;  %v1800_v3 = vld [vmem:[#allocation3 + $0x8] sm:$0xff]   ;;  %v1801_v4 = vld [vmem:[#allocation3 + $0x50] sm:$0xff]  }
  0x27   :  { %1591 = vmatpush3.bf16.msra.mxu0 %v1798_v1  ;;  %1782 = vmatpush3.bf16.msra.mxu1 %v1798_v1  ;;  %v1802_v5 = vld [vmem:[#allocation3 + $0x10] sm:$0xff]   ;;  %v1803_v6 = vld [vmem:[#allocation3 + $0x58] sm:$0xff]   ;;  %v1805_v8 = vld [vmem:[#allocation3 + $0x60] sm:$0xff]  }
  0x28   :  { %1592 = vmatprep.subr.bf16.mxu0 %v1799_v2  ;;  %1775 = vmatprep.subr.bf16.mxu1 %v1799_v2  ;;  %v1804_v7 = vld [vmem:[#allocation3 + $0x18] sm:$0xff]   ;;  %v1806_v9 = vld [vmem:[#allocation3 + $0x20] sm:$0xff]   ;;  %v1807_v10 = vld [vmem:[#allocation3 + $0x68] sm:$0xff]  }
  0x29   :  { %v1815_v11 = vld [vmem:[%s2289_s0 + $0x4] ss:$8 sps:$4 sm:$0xff]   ;;  %v1809_v13 = vld [vmem:[#allocation3 + $0x70] sm:$0xff]   ;;  %v1811_v15 = vld [vmem:[#allocation3 + $0x78] sm:$0xff]   ;;  %1796 = vset.pattern.permute.xlu1 %v1921_v56  ;;  %1795 = vset.pattern.permute.xlu0 %v1921_v56 }
  0x2a   :  { %v1808_v12 = vld [vmem:[#allocation3 + $0x28] sm:$0xff]   ;;  %474 = vmatprep.mubr.bf16.mxu0 %v1815_v11  ;;  %v1810_v14 = vld [vmem:[#allocation3 + $0x30] sm:$0xff]   ;;  %v1812_v16 = vld [vmem:[#allocation3 + $0x38] sm:$0xff]  }
  0x2b   :  { %1593 = vmatpush3.bf16.msra.mxu0 %v1800_v3  ;;  %1783 = vmatpush3.bf16.msra.mxu1 %v1800_v3  ;;  %v1813_v17 = vld [vmem:[%s2289_s0] ss:$8 sps:$4 sm:$0xff]   ;;  %v1845_v18 = vld [vmem:[%s2289_s0 + $0xc4] ss:$8 sps:$4 sm:$0xff]   ;;  %v1816_v19 = vld [vmem:[%s2289_s0 + $0x14] ss:$8 sps:$4 sm:$0xff]  }
  0x2c   :  { %1594 = vmatprep.subr.bf16.mxu0 %v1801_v4  ;;  %1776 = vmatprep.subr.bf16.mxu1 %v1801_v4  ;;  %v1843_v20 = vld [vmem:[%s2289_s0 + $0xc0] ss:$8 sps:$4 sm:$0xff]   ;;  %v1849_v21 = vld [vmem:[%s2289_s0 + $0xd4] ss:$8 sps:$4 sm:$0xff]   ;;  %v1818_v22 = vld [vmem:[%s2289_s0 + $0x10] ss:$8 sps:$4 sm:$0xff]  }
  0x2d   :  { %570 = vmatprep.mubr.bf16.mxu1 %v1845_v18  ;;  %v1819_v23 = vld [vmem:[%s2289_s0 + $0x24] ss:$8 sps:$4 sm:$0xff]   ;;  %v1851_v24 = vld [vmem:[%s2289_s0 + $0xd0] ss:$8 sps:$4 sm:$0xff]   ;;  %v1821_v29 = vld [vmem:[%s2289_s0 + $0x20] ss:$8 sps:$4 sm:$0xff]  }
  0x2e   :  { %v1861_v25 = vld [vmem:[#allocation5] sm:$0xff]   ;;  %v1862_v26 = vld [vmem:[#allocation5 + $0x8] sm:$0xff]   ;;  %v1863_v28 = vld [vmem:[#allocation5 + $0x10] sm:$0xff]  }
  0x2f   :  { %1595 = vmatpush3.bf16.msra.mxu0 %v1802_v5  ;;  %1784 = vmatpush3.bf16.msra.mxu1 %v1802_v5  ;;  %v1855_v27 = vld [vmem:[%s2289_s0 + $0xe4] ss:$8 sps:$4 sm:$0xff]   ;;  %v1864_v30 = vld [vmem:[#allocation5 + $0x18] sm:$0xff]   ;;  %v1857_v32 = vld [vmem:[%s2289_s0 + $0xe0] ss:$8 sps:$4 sm:$0xff]  }
  0x30   :  { %1596 = vmatprep.subr.bf16.mxu0 %v1803_v6  ;;  %1777 = vmatprep.subr.bf16.mxu1 %v1803_v6  ;;  %v1822_v31 = vld [vmem:[%s2289_s0 + $0x34] ss:$8 sps:$4 sm:$0xff]   ;;  %v1824_v34 = vld [vmem:[%s2289_s0 + $0x30] ss:$8 sps:$4 sm:$0xff]   ;;  %v1825_v35 = vld [vmem:[%s2289_s0 + $0x44] ss:$8 sps:$4 sm:$0xff]  }
  0x31   :  { %v1858_v33 = vld [vmem:[%s2289_s0 + $0xf4] ss:$8 sps:$4 sm:$0xff]   ;;  %v1860_v36 = vld [vmem:[%s2289_s0 + $0xf0] ss:$8 sps:$4 sm:$0xff]   ;;  %v1827_v37 = vld [vmem:[%s2289_s0 + $0x40] ss:$8 sps:$4 sm:$0xff]  }
  0x32   :  { %v1828_v38 = vld [vmem:[%s2289_s0 + $0x54] ss:$8 sps:$4 sm:$0xff]   ;;  %v1830_v39 = vld [vmem:[%s2289_s0 + $0x50] ss:$8 sps:$4 sm:$0xff]   ;;  %v1831_v40 = vld [vmem:[%s2289_s0 + $0x64] ss:$8 sps:$4 sm:$0xff]  }
  0x33   :  { %1597 = vmatpush3.bf16.msra.mxu0 %v1804_v7  ;;  %1785 = vmatpush3.bf16.msra.mxu1 %v1804_v7  ;;  %v1833_v41 = vld [vmem:[%s2289_s0 + $0x60] ss:$8 sps:$4 sm:$0xff]   ;;  %v1834_v42 = vld [vmem:[%s2289_s0 + $0x74] ss:$8 sps:$4 sm:$0xff]   ;;  %v1836_v43 = vld [vmem:[%s2289_s0 + $0x70] ss:$8 sps:$4 sm:$0xff]  }
  0x34   :  { %1598 = vmatprep.subr.bf16.mxu0 %v1805_v8  ;;  %1778 = vmatprep.subr.bf16.mxu1 %v1805_v8  ;;  %v1837_v44 = vld [vmem:[%s2289_s0 + $0x84] ss:$8 sps:$4 sm:$0xff]   ;;  %v1839_v45 = vld [vmem:[%s2289_s0 + $0x80] ss:$8 sps:$4 sm:$0xff]   ;;  %v1840_v46 = vld [vmem:[%s2289_s0 + $0x94] ss:$8 sps:$4 sm:$0xff]  }
  0x35   :  { %v1842_v47 = vld [vmem:[%s2289_s0 + $0x90] ss:$8 sps:$4 sm:$0xff]   ;;  %v1846_v48 = vld [vmem:[%s2289_s0 + $0xa4] ss:$8 sps:$4 sm:$0xff]   ;;  %v1848_v49 = vld [vmem:[%s2289_s0 + $0xa0] ss:$8 sps:$4 sm:$0xff]  }
  0x36   :  { %v1852_v50 = vld [vmem:[%s2289_s0 + $0xb4] ss:$8 sps:$4 sm:$0xff]   ;;  %v1865_v51 = vld [vmem:[#allocation5 + $0x20] sm:$0xff]   ;;  %v1854_v52 = vld [vmem:[%s2289_s0 + $0xb0] ss:$8 sps:$4 sm:$0xff]  }
  0x37   :  { %1599 = vmatpush3.bf16.msra.mxu0 %v1806_v9  ;;  %1786 = vmatpush3.bf16.msra.mxu1 %v1806_v9  ;;  %v1866_v53 = vld [vmem:[#allocation5 + $0x28] sm:$0xff]   ;;  %v1867_v54 = vld [vmem:[#allocation5 + $0x30] sm:$0xff]   ;;  %v1868_v55 = vld [vmem:[#allocation5 + $0x38] sm:$0xff]  }
  0x38   :  { %1600 = vmatprep.subr.bf16.mxu0 %v1807_v10  ;;  %1779 = vmatprep.subr.bf16.mxu1 %v1807_v10  ;;  %v736_v57 = vld [vmem:[%s2293_s4 + $0x10] sm:$0xff]  ;;  %v734_v58 = vld [vmem:[%s2293_s4] sm:$0xff]  ;;  %v737_v59 = vld [vmem:[%s2293_s4 + $0x18] sm:$0xff] }
  0x39   :  { %779 = vperm.xlu1 %1796, %v736_v57   ;;  %769 = vperm.xlu0 %1795, %v734_v58   ;;  %v735_v60 = vld [vmem:[%s2293_s4 + $0x8] sm:$0xff]  ;;  %v738_v62 = vld [vmem:[%s2293_s4 + $0x20] sm:$0xff]  ;;  %v741_v63 = vld [vmem:[%s2293_s4 + $0x38] sm:$0xff] }
  0x3a   :  { %v739_v61 = vld [vmem:[%s2293_s4 + $0x28] sm:$0xff]  ;;  %v740_v0 = vld [vmem:[%s2293_s4 + $0x30] sm:$0xff]  ;;  %v742_v2 = vld [vmem:[%s2293_s4 + $0x40] sm:$0xff] }
  0x3b   :  { %1601 = vmatpush3.bf16.msra.mxu0 %v1808_v12  ;;  %1787 = vmatpush3.bf16.msra.mxu1 %v1808_v12  ;;  %v743_v1 = vld [vmem:[%s2293_s4 + $0x48] sm:$0xff]  ;;  %v745_v3 = vld [vmem:[%s2293_s4 + $0x58] sm:$0xff]  ;;  %v744_v4 = vld [vmem:[%s2293_s4 + $0x50] sm:$0xff] }
  0x3c   :  { %1602 = vmatprep.subr.bf16.mxu0 %v1809_v13  ;;  %1780 = vmatprep.subr.bf16.mxu1 %v1809_v13  ;;  %v747_v5 = vld [vmem:[%s2293_s4 + $0x68] sm:$0xff]  ;;  %v746_v6 = vld [vmem:[%s2293_s4 + $0x60] sm:$0xff]  ;;  %v749_v7 = vld [vmem:[%s2293_s4 + $0x78] sm:$0xff] }
  0x3d   :  { %784 = vperm.xlu1 %1796, %v737_v59   ;;  %774 = vperm.xlu0 %1795, %v735_v60   ;;  %v748_v8 = vld [vmem:[%s2293_s4 + $0x70] sm:$0xff]  ;;  %v751_v9 = vld [vmem:[%s2293_s4 + $0x88] sm:$0xff]  ;;  %v750_v10 = vld [vmem:[%s2293_s4 + $0x80] sm:$0xff] }
  0x3e   :  { %v753_v11 = vld [vmem:[%s2293_s4 + $0x98] sm:$0xff]  ;;  %v752_v12 = vld [vmem:[%s2293_s4 + $0x90] sm:$0xff]  ;;  %v755_v13 = vld [vmem:[%s2293_s4 + $0xa8] sm:$0xff] }
  0x3f   :  { %1603 = vmatpush3.bf16.msra.mxu0 %v1810_v14  ;;  %1788 = vmatpush3.bf16.msra.mxu1 %v1810_v14  ;;  %v754_v14 = vld [vmem:[%s2293_s4 + $0xa0] sm:$0xff] }
  0x40   :  { %1604 = vmatprep.subr.bf16.mxu0 %v1811_v15  ;;  %1781 = vmatprep.subr.bf16.mxu1 %v1811_v15  ;;  %v757_v15 = vld [vmem:[%s2293_s4 + $0xb8] sm:$0xff]  ;;  %v758_v18 = vld [vmem:[%s2293_s4 + $0xc0] sm:$0xff] }
  0x41   :  { %794 = vperm.xlu1 %1796, %v739_v61   ;;  %789 = vperm.xlu0 %1795, %v738_v62  }
  0x43   :  { %1605 = vmatpush3.bf16.msra.mxu0 %v1812_v16  ;;  %1789 = vmatpush3.bf16.msra.mxu1 %v1812_v16  ;;  %v756_v16 = vld [vmem:[%s2293_s4 + $0xb0] sm:$0xff] }
  0x44   :  { %1726 = vmatprep.subr.bf16.mxu1 %v1861_v25 }
  0x45   :  { %804 = vperm.xlu1 %1796, %v741_v63   ;;  %799 = vperm.xlu0 %1795, %v740_v0  }
  0x46   :  { %475 = vmatmul.mubr.bf16.vlgmr.msra.gmra.mrb[0].mxu0 %v1813_v17  ;;  %571 = vmatmul.mubr.bf16.vlgmr.msra.gmra.mrb[0].mxu1 %v1843_v20  ;;  %v759_v17 = vld [vmem:[%s2293_s4 + $0xc8] sm:$0xff]  ;;  %v760_v20 = vld [vmem:[%s2293_s4 + $0xd0] sm:$0xff] }
  0x47   :  { %482 = vmatprep.mubr.bf16.mxu0 %v1816_v19  ;;  %578 = vmatprep.mubr.bf16.mxu1 %v1849_v21  ;;  %v761_v19 = vld [vmem:[%s2293_s4 + $0xd8] sm:$0xff] }
  0x48   :  { %1727 = vmatpush3.bf16.msra.mxu1 %v1861_v25 }
  0x49   :  { %1728 = vmatprep.subr.bf16.mxu1 %v1862_v26  ;;  %814 = vperm.xlu1 %1796, %v743_v1  }
  0x4a   :  { %809 = vperm.xlu0 %1795, %v742_v2  }
  0x4c   :  { %1729 = vmatpush3.bf16.msra.mxu1 %v1862_v26 }
  0x4d   :  { %1730 = vmatprep.subr.bf16.mxu1 %v1863_v28  ;;  %824 = vperm.xlu1 %1796, %v745_v3  }
  0x4e   :  { %483 = vmatmul.mubr.bf16.gmra.mrb[4].mxu0 %v1818_v22  ;;  %579 = vmatmul.mubr.bf16.gmra.mrb[4].mxu1 %v1851_v24 }
  0x4f   :  { %490 = vmatprep.mubr.bf16.mxu0 %v1819_v23  ;;  %586 = vmatprep.mubr.bf16.mxu1 %v1855_v27  ;;  %v763_v27 = vld [vmem:[%s2293_s4 + $0xe8] sm:$0xff] }
  0x50   :  { %1731 = vmatpush3.bf16.msra.mxu1 %v1863_v28  ;;  %819 = vperm.xlu0 %1795, %v744_v4   ;;  %v762_v28 = vld [vmem:[%s2293_s4 + $0xe0] sm:$0xff] }
  0x51   :  { %1732 = vmatprep.subr.bf16.mxu1 %v1864_v30  ;;  %834 = vperm.xlu1 %1796, %v747_v5  }
  0x54   :  { %1733 = vmatpush3.bf16.msra.mxu1 %v1864_v30  ;;  %829 = vperm.xlu0 %1795, %v746_v6  }
  0x55   :  { %1734 = vmatprep.subr.bf16.mxu1 %v1865_v51  ;;  %844 = vperm.xlu1 %1796, %v749_v7  }
  0x56   :  { %491 = vmatmul.mubr.bf16.gmra.mrb[8].mxu0 %v1821_v29  ;;  %587 = vmatmul.mubr.bf16.gmra.mrb[8].mxu1 %v1857_v32 }
  0x57   :  { %498 = vmatprep.mubr.bf16.mxu0 %v1822_v31  ;;  %594 = vmatprep.mubr.bf16.mxu1 %v1858_v33 }
  0x58   :  { %1735 = vmatpush3.bf16.msra.mxu1 %v1865_v51  ;;  %839 = vperm.xlu0 %1795, %v748_v8  }
  0x59   :  { %1736 = vmatprep.subr.bf16.mxu1 %v1866_v53  ;;  %854 = vperm.xlu1 %1796, %v751_v9  }
  0x5c   :  { %1737 = vmatpush3.bf16.msra.mxu1 %v1866_v53  ;;  %849 = vperm.xlu0 %1795, %v750_v10  }
  0x5d   :  { %1738 = vmatprep.subr.bf16.mxu1 %v1867_v54  ;;  %864 = vperm.xlu1 %1796, %v753_v11  }
  0x5e   :  { %499 = vmatmul.mubr.bf16.gmra.mrb[12].mxu0 %v1824_v34  ;;  %595 = vmatmul.mubr.bf16.gmra.mrb[12].mxu1 %v1860_v36  ;;  %v765_v36 = vld [vmem:[%s2293_s4 + $0xf8] sm:$0xff] }
  0x5f   :  { %506 = vmatprep.mubr.bf16.mxu0 %v1825_v35 }
  0x60   :  { %1739 = vmatpush3.bf16.msra.mxu1 %v1867_v54  ;;  %859 = vperm.xlu0 %1795, %v752_v12  }
  0x61   :  { %1740 = vmatprep.subr.bf16.mxu1 %v1868_v55  ;;  %874 = vperm.xlu1 %1796, %v755_v13  }
  0x64   :  { %1741 = vmatpush3.bf16.msra.mxu1 %v1868_v55  ;;  %869 = vperm.xlu0 %1795, %v754_v14  }
  0x65   :  { %884 = vperm.xlu1 %1796, %v757_v15  }
  0x66   :  { %507 = vmatmul.mubr.bf16.gmra.mrb[16].mxu0 %v1827_v37  ;;  %v764_v37 = vld [vmem:[%s2293_s4 + $0xf0] sm:$0xff] }
  0x67   :  { %514 = vmatprep.mubr.bf16.mxu0 %v1828_v38 }
  0x68   :  { %879 = vperm.xlu0 %1795, %v756_v16  }
  0x69   :  { %894 = vperm.xlu1 %1796, %v759_v17  }
  0x6c   :  { %889 = vperm.xlu0 %1795, %v758_v18  }
  0x6d   :  { %904 = vperm.xlu1 %1796, %v761_v19  }
  0x6e   :  { %515 = vmatmul.mubr.bf16.gmra.mrb[20].mxu0 %v1830_v39 }
  0x6f   :  { %522 = vmatprep.mubr.bf16.mxu0 %v1831_v40 }
  0x70   :  { %899 = vperm.xlu0 %1795, %v760_v20  }
  0x71   :  { %914 = vperm.xlu1 %1796, %v763_v27  }
  0x74   :  { %909 = vperm.xlu0 %1795, %v762_v28  }
  0x75   :  { %924 = vperm.xlu1 %1796, %v765_v36  }
  0x76   :  { %523 = vmatmul.mubr.bf16.gmra.mrb[24].mxu0 %v1833_v41 }
  0x77   :  { %530 = vmatprep.mubr.bf16.mxu0 %v1834_v42 }
  0x78   :  { %919 = vperm.xlu0 %1795, %v764_v37  }
  0x7e   :  { %531 = vmatmul.mubr.bf16.gmra.mrb[28].mxu0 %v1836_v43 }
  0x7f   :  { %538 = vmatprep.mubr.bf16.mxu0 %v1837_v44 }
  0x86   :  { %539 = vmatmul.mubr.bf16.gmra.mrb[32].mxu0 %v1839_v45 }
  0x87   :  { %546 = vmatprep.mubr.bf16.mxu0 %v1840_v46 }
  0x8e   :  { %547 = vmatmul.mubr.bf16.gmra.mrb[36].mxu0 %v1842_v47 }
  0x8f   :  { %554 = vmatprep.mubr.bf16.mxu0 %v1846_v48 }
  0x96   :  { %555 = vmatmul.mubr.bf16.gmra.mrb[40].mxu0 %v1848_v49 }
  0x97   :  { %562 = vmatprep.mubr.bf16.mxu0 %v1852_v50 }
  0x9e   :  { %563 = vmatmul.mubr.bf16.gmra.mrb[44].mxu0 %v1854_v52 }
 0x119   :  { %v1606_v21 = vpop.f32.mrb[0].mxu0  ;;  %v1678_v23 = vpop.f32.mrb[0].mxu1 }
 0x11a   :  { %v1607_v22 = vpop.f32.mrb[1].mxu0  ;;  %v1679_v26 = vpop.f32.mrb[1].mxu1 }
 0x11b   :  { %v1608_v24 = vadd.f32 %v1607_v22, %v1606_v21  ;;  %v1609_v25 = vpop.f32.mrb[2].mxu0  ;;  %v2162_v30 = vadd.f32 %v1679_v26, %v1678_v23  ;;  %v1681_v31 = vpop.f32.mrb[2].mxu1 }
 0x11c   :  { %v1610_v29 = vpop.f32.mrb[3].mxu0  ;;  %v1682_v33 = vpop.f32.mrb[3].mxu1 }
 0x11d   :  { %v1611_v32 = vadd.f32 %v1610_v29, %v1609_v25  ;;  %v2164_v34 = vadd.f32 %v1682_v33, %v1681_v31 }
 0x11f   :  { %v702_v35 = vpack.c.bf16 %v1611_v32, %v1608_v24  ;;  %v714_v38 = vpack.c.bf16 %v2164_v34, %v2162_v30 }
 0x121   :  { %v1612_v39 = vpop.f32.mrb[4].mxu0  ;;  %1742 = vmatprep.mubr.bf16.mxu1 %v702_v35  ;;  %v1684_v41 = vpop.f32.mrb[4].mxu1 }
 0x122   :  { %v1613_v40 = vpop.f32.mrb[5].mxu0  ;;  %v1685_v44 = vpop.f32.mrb[5].mxu1 }
 0x123   :  { %v1614_v42 = vadd.f32 %v1613_v40, %v1612_v39  ;;  %v1615_v43 = vpop.f32.mrb[6].mxu0  ;;  %v2174_v46 = vadd.f32 %v1685_v44, %v1684_v41  ;;  %v1687_v47 = vpop.f32.mrb[6].mxu1 }
 0x124   :  { %v1616_v45 = vpop.f32.mrb[7].mxu0  ;;  %v1688_v49 = vpop.f32.mrb[7].mxu1 }
 0x125   :  { %v1617_v48 = vadd.f32 %v1616_v45, %v1615_v43  ;;  %v2176_v50 = vadd.f32 %v1688_v49, %v1687_v47 }
 0x127   :  { %v703_v51 = vpack.c.bf16 %v1617_v48, %v1614_v42  ;;  %v715_v52 = vpack.c.bf16 %v2176_v50, %v2174_v46 }
 0x129   :  { %v1618_v53 = vpop.f32.mrb[8].mxu0  ;;  %1743 = vmatmul.mubr.bf16.vlgmr.msra.gmra.mrb[16].mxu1 %v703_v51  ;;  %v1690_v55 = vpop.f32.mrb[8].mxu1 }
 0x12a   :  { %v1619_v54 = vpop.f32.mrb[9].mxu0  ;;  %v1691_v58 = vpop.f32.mrb[9].mxu1 }
 0x12b   :  { %v1620_v56 = vadd.f32 %v1619_v54, %v1618_v53  ;;  %v1621_v57 = vpop.f32.mrb[10].mxu0  ;;  %v2180_v60 = vadd.f32 %v1691_v58, %v1690_v55  ;;  %v1693_v61 = vpop.f32.mrb[10].mxu1 }
 0x12c   :  { %v1622_v59 = vpop.f32.mrb[11].mxu0  ;;  %v1694_v63 = vpop.f32.mrb[11].mxu1 }
 0x12d   :  { %v1623_v62 = vadd.f32 %v1622_v59, %v1621_v57  ;;  %v2182_v0 = vadd.f32 %v1694_v63, %v1693_v61 }
 0x12f   :  { %v704_v1 = vpack.c.bf16 %v1623_v62, %v1620_v56  ;;  %v716_v2 = vpack.c.bf16 %v2182_v0, %v2180_v60 }
 0x131   :  { %v1624_v3 = vpop.f32.mrb[12].mxu0  ;;  %1746 = vmatprep.mubr.bf16.mxu1 %v704_v1  ;;  %v1696_v5 = vpop.f32.mrb[12].mxu1 }
 0x132   :  { %v1625_v4 = vpop.f32.mrb[13].mxu0  ;;  %v1697_v8 = vpop.f32.mrb[13].mxu1 }
 0x133   :  { %v1626_v6 = vadd.f32 %v1625_v4, %v1624_v3  ;;  %v1627_v7 = vpop.f32.mrb[14].mxu0  ;;  %v2186_v10 = vadd.f32 %v1697_v8, %v1696_v5  ;;  %v1699_v11 = vpop.f32.mrb[14].mxu1 }
 0x134   :  { %v1628_v9 = vpop.f32.mrb[15].mxu0  ;;  %v1700_v13 = vpop.f32.mrb[15].mxu1 }
 0x135   :  { %v1629_v12 = vadd.f32 %v1628_v9, %v1627_v7  ;;  %v2188_v14 = vadd.f32 %v1700_v13, %v1699_v11 }
 0x137   :  { %v705_v15 = vpack.c.bf16 %v1629_v12, %v1626_v6  ;;  %v717_v16 = vpack.c.bf16 %v2188_v14, %v2186_v10 }
 0x139   :  { %v1630_v17 = vpop.f32.mrb[16].mxu0  ;;  %1747 = vmatmul.mubr.bf16.gmra.mrb[20].mxu1 %v705_v15 }
 0x13a   :  { %v1631_v18 = vpop.f32.mrb[17].mxu0 }
 0x13b   :  { %v1632_v19 = vadd.f32 %v1631_v18, %v1630_v17  ;;  %v1633_v20 = vpop.f32.mrb[18].mxu0 }
 0x13c   :  { %v1634_v21 = vpop.f32.mrb[19].mxu0 }
 0x13d   :  { %v1635_v22 = vadd.f32 %v1634_v21, %v1633_v20  ;;  %v780_v21 = vpop.permute.xlu1 %779 }
 0x13f   :  { %v706_v23 = vpack.c.bf16 %v1635_v22, %v1632_v19  ;;  %v770_v22 = vpop.permute.xlu0 %769 }
 0x141   :  { %v1636_v24 = vpop.f32.mrb[20].mxu0  ;;  %1750 = vmatprep.mubr.bf16.mxu1 %v706_v23  ;;  %v2207_v23 = vld [vmem:[%s2292_s3] ss:$0 sm:$0xff] }
 0x142   :  { %v1637_v25 = vpop.f32.mrb[21].mxu0  ;;  %v935_v30 = vmul.f32 %v2207_v23, %v780_v21  ;;  %v933_v34 = vmul.f32 %v2207_v23, %v770_v22 }
 0x143   :  { %v1638_v26 = vadd.f32 %v1637_v25, %v1636_v24  ;;  %v1639_v27 = vpop.f32.mrb[22].mxu0  ;;  %v775_v50 = vpop.permute.xlu0 %774 }
 0x144   :  { %v1640_v28 = vpop.f32.mrb[23].mxu0 }
 0x145   :  { %v1641_v29 = vadd.f32 %v1640_v28, %v1639_v27 }
 0x147   :  { %v707_v31 = vpack.c.bf16 %v1641_v29, %v1638_v26  ;;  %v790_v28 = vpop.permute.xlu0 %789 }
 0x149   :  { %v1642_v32 = vpop.f32.mrb[24].mxu0  ;;  %1751 = vmatmul.mubr.bf16.gmra.mrb[24].mxu1 %v707_v31 }
 0x14a   :  { %v1643_v33 = vpop.f32.mrb[25].mxu0 }
 0x14b   :  { %v1644_v35 = vadd.f32 %v1643_v33, %v1642_v32  ;;  %v1645_v36 = vpop.f32.mrb[26].mxu0 }
 0x14c   :  { %v1646_v37 = vpop.f32.mrb[27].mxu0 }
 0x14d   :  { %v1647_v39 = vadd.f32 %v1646_v37, %v1645_v36  ;;  %v800_v36 = vpop.permute.xlu0 %799 }
 0x14e   :  { %v939_v37 = vmul.f32 %v2207_v23, %v800_v36 }
 0x14f   :  { %v708_v40 = vpack.c.bf16 %v1647_v39, %v1644_v35  ;;  %v937_v39 = vmul.f32 %v2207_v23, %v790_v28 }
 0x151   :  { %v1648_v41 = vpop.f32.mrb[28].mxu0  ;;  %1754 = vmatprep.mubr.bf16.mxu1 %v708_v40 }
 0x152   :  { %v1649_v42 = vpop.f32.mrb[29].mxu0 }
 0x153   :  { %v1650_v43 = vadd.f32 %v1649_v42, %v1648_v41  ;;  %v1651_v44 = vpop.f32.mrb[30].mxu0 }
 0x154   :  { %v1652_v45 = vpop.f32.mrb[31].mxu0 }
 0x155   :  { %v1653_v47 = vadd.f32 %v1652_v45, %v1651_v44 }
 0x157   :  { %v709_v48 = vpack.c.bf16 %v1653_v47, %v1650_v43 }
 0x159   :  { %v1654_v49 = vpop.f32.mrb[32].mxu0  ;;  %1755 = vmatmul.mubr.bf16.gmra.mrb[28].mxu1 %v709_v48 }
 0x15a   :  { %v1655_v51 = vpop.f32.mrb[33].mxu0 }
 0x15b   :  { %v1656_v53 = vadd.f32 %v1655_v51, %v1654_v49  ;;  %v1657_v54 = vpop.f32.mrb[34].mxu0 }
 0x15c   :  { %v1658_v55 = vpop.f32.mrb[35].mxu0 }
 0x15d   :  { %v1659_v56 = vadd.f32 %v1658_v55, %v1657_v54 }
 0x15f   :  { %v710_v57 = vpack.c.bf16 %v1659_v56, %v1656_v53  ;;  %v810_v56 = vpop.permute.xlu0 %809 }
 0x161   :  { %v1660_v58 = vpop.f32.mrb[36].mxu0  ;;  %1758 = vmatprep.mubr.bf16.mxu1 %v710_v57 }
 0x162   :  { %v1661_v59 = vpop.f32.mrb[37].mxu0 }
 0x163   :  { %v1662_v61 = vadd.f32 %v1661_v59, %v1660_v58  ;;  %v1663_v62 = vpop.f32.mrb[38].mxu0 }
 0x164   :  { %v1664_v63 = vpop.f32.mrb[39].mxu0 }
 0x165   :  { %v1665_v1 = vadd.f32 %v1664_v63, %v1663_v62  ;;  %v820_v63 = vpop.permute.xlu0 %819 }
 0x167   :  { %v711_v3 = vpack.c.bf16 %v1665_v1, %v1662_v61  ;;  %v943_v1 = vmul.f32 %v2207_v23, %v820_v63 }
 0x169   :  { %v1666_v4 = vpop.f32.mrb[40].mxu0  ;;  %1759 = vmatmul.mubr.bf16.gmra.mrb[32].mxu1 %v711_v3  ;;  %v941_v3 = vmul.f32 %v2207_v23, %v810_v56 }
 0x16a   :  { %v1667_v5 = vpop.f32.mrb[41].mxu0 }
 0x16b   :  { %v1668_v6 = vadd.f32 %v1667_v5, %v1666_v4  ;;  %v1669_v7 = vpop.f32.mrb[42].mxu0 }
 0x16c   :  { %v1670_v8 = vpop.f32.mrb[43].mxu0 }
 0x16d   :  { %v1671_v9 = vadd.f32 %v1670_v8, %v1669_v7 }
 0x16f   :  { %v712_v11 = vpack.c.bf16 %v1671_v9, %v1668_v6 }
 0x171   :  { %v1672_v12 = vpop.f32.mrb[44].mxu0  ;;  %1762 = vmatprep.mubr.bf16.mxu1 %v712_v11 }
 0x172   :  { %v1673_v13 = vpop.f32.mrb[45].mxu0 }
 0x173   :  { %v1674_v15 = vadd.f32 %v1673_v13, %v1672_v12  ;;  %v1675_v17 = vpop.f32.mrb[46].mxu0 }
 0x174   :  { %v1676_v18 = vpop.f32.mrb[47].mxu0 }
 0x175   :  { %v1677_v19 = vadd.f32 %v1676_v18, %v1675_v17 }
 0x177   :  { %v713_v20 = vpack.c.bf16 %v1677_v19, %v1674_v15 }
 0x179   :  { %1763 = vmatmul.mubr.bf16.gmra.mrb[36].mxu1 %v713_v20  ;;  %v830_v20 = vpop.permute.xlu0 %829 }
 0x17a   :  { %1766 = vmatprep.mubr.bf16.mxu1 %v714_v38  ;;  %v785_v38 = vpop.permute.xlu1 %784 }
 0x17b   :  { %v936_v46 = vmul.f32 %v2207_v23, %v785_v38 }
 0x17e   :  { %v795_v33 = vpop.permute.xlu1 %794 }
 0x17f   :  { %v938_v42 = vmul.f32 %v2207_v23, %v795_v33 }
 0x181   :  { %1767 = vmatmul.mubr.bf16.gmra.mrb[40].mxu1 %v715_v52  ;;  %v934_v52 = vmul.f32 %v2207_v23, %v775_v50 }
 0x182   :  { %1770 = vmatprep.mubr.bf16.mxu1 %v716_v2  ;;  %v805_v40 = vpop.permute.xlu1 %804 }
 0x183   :  { %v940_v41 = vmul.f32 %v2207_v23, %v805_v40 }
 0x186   :  { %v815_v61 = vpop.permute.xlu1 %814 }
 0x187   :  { %v942_v6 = vmul.f32 %v2207_v23, %v815_v61 }
 0x189   :  { %1771 = vmatmul.mubr.bf16.gmra.mrb[44].mxu1 %v717_v16 }
 0x18a   :  { %v825_v4 = vpop.permute.xlu1 %824 }
 0x18b   :  { %v944_v5 = vmul.f32 %v2207_v23, %v825_v4 }
 0x1fc   :  { %v1744_v60 = vpop.f32.mrb[16].mxu1 }
 0x1fd   :  { %v1056_v0 = vadd.f32 %v1744_v60, %v935_v30  ;;  %v1047_v2 = vpop.f32.mrb[17].mxu1  ;;  %v945_v60 = vmul.f32 %v2207_v23, %v830_v20 }
 0x1fe   :  { %v1048_v10 = vadd.f32 %v1047_v2, %v933_v34  ;;  %v1745_v14 = vpop.f32.mrb[18].mxu1  ;;  %v835_v34 = vpop.permute.xlu1 %834 }
 0x1ff   :  { %v1059_v16 = vadd.f32 %v1745_v14, %v936_v46  ;;  %v1050_v24 = vpop.f32.mrb[19].mxu1  ;;  %v1176_v26 = vmax.f32 %v1056_v0, 0.0  ;;  %v840_v46 = vpop.permute.xlu0 %839 }
 0x200   :  { %v1051_v25 = vadd.f32 %v1050_v24, %v934_v52  ;;  %v1174_v29 = vmax.f32 %v1048_v10, 0.0  ;;  %v947_v52 = vmul.f32 %v2207_v23, %v840_v46 }
 0x201   :  { %v1177_v27 = vmax.f32 %v1059_v16, 0.0  ;;  %v946_v16 = vmul.f32 %v2207_v23, %v835_v34 }
 0x202   :  { %v1175_v31 = vmax.f32 %v1051_v25, 0.0  ;;  %v845_v50 = vpop.permute.xlu1 %844 }
 0x203   :  { %v1503_v32 = vpack.c.bf16 %v1177_v27, %v1176_v26  ;;  %v948_v2 = vmul.f32 %v2207_v23, %v845_v50  ;;  %v850_v24 = vpop.permute.xlu0 %849 }
 0x204   :  { %v1498_v35 = vpack.c.bf16 %v1175_v31, %v1174_v29 }
 0x205   :  { %1575 = vst [vmem:[%s2294_s5 + $0x8] sm:$0xff] %v1503_v32  }
 0x206   :  { %1499 = vst [vmem:[%s2294_s5] sm:$0xff] %v1498_v35   ;;  %v855_v29 = vpop.permute.xlu1 %854 }
 0x20c   :  { %v1748_v43 = vpop.f32.mrb[20].mxu1 }
 0x20d   :  { %v1072_v44 = vadd.f32 %v1748_v43, %v939_v37  ;;  %v1063_v45 = vpop.f32.mrb[21].mxu1 }
 0x20e   :  { %v1064_v47 = vadd.f32 %v1063_v45, %v937_v39  ;;  %v1749_v48 = vpop.f32.mrb[22].mxu1  ;;  %v860_v39 = vpop.permute.xlu0 %859 }
 0x20f   :  { %v1075_v49 = vadd.f32 %v1749_v48, %v940_v41  ;;  %v1066_v51 = vpop.f32.mrb[23].mxu1  ;;  %v1180_v54 = vmax.f32 %v1072_v44, 0.0  ;;  %v865_v41 = vpop.permute.xlu1 %864  ;;  %v951_v43 = vmul.f32 %v2207_v23, %v860_v39  ;;  %v949_v44 = vmul.f32 %v2207_v23, %v850_v24 }
 0x210   :  { %v1067_v53 = vadd.f32 %v1066_v51, %v938_v42  ;;  %v1178_v57 = vmax.f32 %v1064_v47, 0.0  ;;  %v952_v48 = vmul.f32 %v2207_v23, %v865_v41 }
 0x211   :  { %v1181_v55 = vmax.f32 %v1075_v49, 0.0 }
 0x212   :  { %v1179_v58 = vmax.f32 %v1067_v53, 0.0  ;;  %v870_v42 = vpop.permute.xlu0 %869  ;;  %v950_v53 = vmul.f32 %v2207_v23, %v855_v29 }
 0x213   :  { %v1513_v59 = vpack.c.bf16 %v1181_v55, %v1180_v54  ;;  %v875_v45 = vpop.permute.xlu1 %874 }
 0x214   :  { %v1508_v62 = vpack.c.bf16 %v1179_v58, %v1178_v57 }
 0x215   :  { %1577 = vst [vmem:[%s2294_s5 + $0x18] sm:$0xff] %v1513_v59  }
 0x216   :  { %1576 = vst [vmem:[%s2294_s5 + $0x10] sm:$0xff] %v1508_v62   ;;  %v880_v58 = vpop.permute.xlu0 %879 }
 0x217   :  { %v885_v63 = vpop.permute.xlu1 %884 }
 0x21c   :  { %v1752_v7 = vpop.f32.mrb[24].mxu1 }
 0x21d   :  { %v1088_v8 = vadd.f32 %v1752_v7, %v943_v1  ;;  %v1079_v9 = vpop.f32.mrb[25].mxu1  ;;  %v895_v7 = vpop.permute.xlu1 %894 }
 0x21e   :  { %v1080_v11 = vadd.f32 %v1079_v9, %v941_v3  ;;  %v1753_v12 = vpop.f32.mrb[26].mxu1  ;;  %v953_v9 = vmul.f32 %v2207_v23, %v870_v42 }
 0x21f   :  { %v1091_v13 = vadd.f32 %v1753_v12, %v944_v5  ;;  %v1082_v15 = vpop.f32.mrb[27].mxu1  ;;  %v1184_v18 = vmax.f32 %v1088_v8, 0.0  ;;  %v955_v8 = vmul.f32 %v2207_v23, %v880_v58 }
 0x220   :  { %v1083_v17 = vadd.f32 %v1082_v15, %v942_v6  ;;  %v1182_v21 = vmax.f32 %v1080_v11, 0.0  ;;  %v890_v6 = vpop.permute.xlu0 %889 }
 0x221   :  { %v1185_v19 = vmax.f32 %v1091_v13, 0.0  ;;  %v956_v13 = vmul.f32 %v2207_v23, %v885_v63 }
 0x222   :  { %v1183_v22 = vmax.f32 %v1083_v17, 0.0 }
 0x223   :  { %v1523_v30 = vpack.c.bf16 %v1185_v19, %v1184_v18  ;;  %v954_v18 = vmul.f32 %v2207_v23, %v875_v45  ;;  %v905_v19 = vpop.permute.xlu1 %904 }
 0x224   :  { %v1518_v38 = vpack.c.bf16 %v1183_v22, %v1182_v21  ;;  %v900_v11 = vpop.permute.xlu0 %899 }
 0x225   :  { %1579 = vst [vmem:[%s2294_s5 + $0x28] sm:$0xff] %v1523_v30  }
 0x226   :  { %1578 = vst [vmem:[%s2294_s5 + $0x20] sm:$0xff] %v1518_v38  }
 0x228   :  { %v910_v50 = vpop.permute.xlu0 %909 }
 0x229   :  { %v961_v45 = vmul.f32 %v2207_v23, %v910_v50 }
 0x22c   :  { %v1756_v0 = vpop.f32.mrb[28].mxu1 }
 0x22d   :  { %v1104_v10 = vadd.f32 %v1756_v0, %v947_v52  ;;  %v1095_v14 = vpop.f32.mrb[29].mxu1  ;;  %v959_v0 = vmul.f32 %v2207_v23, %v900_v11 }
 0x22e   :  { %v1096_v25 = vadd.f32 %v1095_v14, %v945_v60  ;;  %v1757_v26 = vpop.f32.mrb[30].mxu1  ;;  %v915_v14 = vpop.permute.xlu1 %914 }
 0x22f   :  { %v1107_v27 = vadd.f32 %v1757_v26, %v948_v2  ;;  %v1098_v28 = vpop.f32.mrb[31].mxu1  ;;  %v1188_v32 = vmax.f32 %v1104_v10, 0.0  ;;  %v957_v10 = vmul.f32 %v2207_v23, %v890_v6 }
 0x230   :  { %v1099_v31 = vadd.f32 %v1098_v28, %v946_v16  ;;  %v1186_v35 = vmax.f32 %v1096_v25, 0.0  ;;  %v960_v25 = vmul.f32 %v2207_v23, %v905_v19  ;;  %v958_v28 = vmul.f32 %v2207_v23, %v895_v7 }
 0x231   :  { %v1189_v33 = vmax.f32 %v1107_v27, 0.0 }
 0x232   :  { %v1187_v36 = vmax.f32 %v1099_v31, 0.0 }
 0x233   :  { %v1533_v37 = vpack.c.bf16 %v1189_v33, %v1188_v32 }
 0x234   :  { %v1528_v40 = vpack.c.bf16 %v1187_v36, %v1186_v35  ;;  %v920_v35 = vpop.permute.xlu0 %919 }
 0x235   :  { %1581 = vst [vmem:[%s2294_s5 + $0x38] sm:$0xff] %v1533_v37  }
 0x236   :  { %1580 = vst [vmem:[%s2294_s5 + $0x30] sm:$0xff] %v1528_v40   ;;  %v925_v40 = vpop.permute.xlu1 %924 }
 0x23c   :  { %v1760_v47 = vpop.f32.mrb[32].mxu1 }
 0x23d   :  { %v1120_v49 = vadd.f32 %v1760_v47, %v951_v43  ;;  %v1111_v51 = vpop.f32.mrb[33].mxu1  ;;  %v963_v43 = vmul.f32 %v2207_v23, %v920_v35 }
 0x23e   :  { %v1112_v54 = vadd.f32 %v1111_v51, %v949_v44  ;;  %v1761_v55 = vpop.f32.mrb[34].mxu1 }
 0x23f   :  { %v1123_v56 = vadd.f32 %v1761_v55, %v952_v48  ;;  %v1114_v57 = vpop.f32.mrb[35].mxu1  ;;  %v1192_v61 = vmax.f32 %v1120_v49, 0.0  ;;  %v964_v49 = vmul.f32 %v2207_v23, %v925_v40 }
 0x240   :  { %v1115_v59 = vadd.f32 %v1114_v57, %v950_v53  ;;  %v1190_v1 = vmax.f32 %v1112_v54, 0.0  ;;  %v962_v54 = vmul.f32 %v2207_v23, %v915_v14 }
 0x241   :  { %v1193_v62 = vmax.f32 %v1123_v56, 0.0 }
 0x242   :  { %v1191_v3 = vmax.f32 %v1115_v59, 0.0 }
 0x243   :  { %v1543_v4 = vpack.c.bf16 %v1193_v62, %v1192_v61 }
 0x244   :  { %v1538_v5 = vpack.c.bf16 %v1191_v3, %v1190_v1 }
 0x245   :  { %1583 = vst [vmem:[%s2294_s5 + $0x48] sm:$0xff] %v1543_v4  }
 0x246   :  { %1582 = vst [vmem:[%s2294_s5 + $0x40] sm:$0xff] %v1538_v5  }
 0x24c   :  { %v1764_v12 = vpop.f32.mrb[36].mxu1 }
 0x24d   :  { %v1136_v15 = vadd.f32 %v1764_v12, %v955_v8  ;;  %v1127_v17 = vpop.f32.mrb[37].mxu1 }
 0x24e   :  { %v1128_v20 = vadd.f32 %v1127_v17, %v953_v9  ;;  %v1765_v21 = vpop.f32.mrb[38].mxu1 }
 0x24f   :  { %v1139_v22 = vadd.f32 %v1765_v21, %v956_v13  ;;  %v1130_v30 = vpop.f32.mrb[39].mxu1  ;;  %v1196_v38 = vmax.f32 %v1136_v15, 0.0 }
 0x250   :  { %v1131_v34 = vadd.f32 %v1130_v30, %v954_v18  ;;  %v1194_v52 = vmax.f32 %v1128_v20, 0.0 }
 0x251   :  { %v1197_v46 = vmax.f32 %v1139_v22, 0.0 }
 0x252   :  { %v1195_v60 = vmax.f32 %v1131_v34, 0.0 }
 0x253   :  { %v1553_v2 = vpack.c.bf16 %v1197_v46, %v1196_v38 }
 0x254   :  { %v1548_v16 = vpack.c.bf16 %v1195_v60, %v1194_v52  ;;  %v1768_v24 = vpop.f32.mrb[40].mxu1 }
 0x255   :  { %1585 = vst [vmem:[%s2294_s5 + $0x58] sm:$0xff] %v1553_v2   ;;  %v1152_v26 = vadd.f32 %v1768_v24, %v959_v0  ;;  %v1143_v27 = vpop.f32.mrb[41].mxu1 }
 0x256   :  { %1584 = vst [vmem:[%s2294_s5 + $0x50] sm:$0xff] %v1548_v16   ;;  %v1144_v29 = vadd.f32 %v1143_v27, %v957_v10  ;;  %v1769_v31 = vpop.f32.mrb[42].mxu1 }
 0x257   :  { %v1155_v32 = vadd.f32 %v1769_v31, %v960_v25  ;;  %v1146_v33 = vpop.f32.mrb[43].mxu1  ;;  %v1200_v37 = vmax.f32 %v1152_v26, 0.0 }
 0x258   :  { %v1147_v36 = vadd.f32 %v1146_v33, %v958_v28  ;;  %v1198_v41 = vmax.f32 %v1144_v29, 0.0 }
 0x259   :  { %v1201_v39 = vmax.f32 %v1155_v32, 0.0 }
 0x25a   :  { %v1199_v42 = vmax.f32 %v1147_v36, 0.0 }
 0x25b   :  { %v1563_v44 = vpack.c.bf16 %v1201_v39, %v1200_v37 }
 0x25c   :  { %v1558_v47 = vpack.c.bf16 %v1199_v42, %v1198_v41  ;;  %v1772_v48 = vpop.f32.mrb[44].mxu1 }
 0x25d   :  { %1587 = vst [vmem:[%s2294_s5 + $0x68] sm:$0xff] %v1563_v44   ;;  %v1168_v51 = vadd.f32 %v1772_v48, %v963_v43  ;;  %v1159_v53 = vpop.f32.mrb[45].mxu1 }
 0x25e   :  { %1586 = vst [vmem:[%s2294_s5 + $0x60] sm:$0xff] %v1558_v47   ;;  %v1160_v55 = vadd.f32 %v1159_v53, %v961_v45  ;;  %v1773_v56 = vpop.f32.mrb[46].mxu1 }
 0x25f   :  { %v1171_v57 = vadd.f32 %v1773_v56, %v964_v49  ;;  %v1162_v58 = vpop.f32.mrb[47].mxu1  ;;  %v1204_v61 = vmax.f32 %v1168_v51, 0.0 }
 0x260   :  { %v1163_v59 = vadd.f32 %v1162_v58, %v962_v54  ;;  %v1202_v63 = vmax.f32 %v1160_v55, 0.0 }
 0x261   :  { %v1205_v62 = vmax.f32 %v1171_v57, 0.0 }
 0x262   :  { %v1203_v1 = vmax.f32 %v1163_v59, 0.0 }
 0x263   :  { %v1573_v3 = vpack.c.bf16 %v1205_v62, %v1204_v61 }
 0x264   :  { %v1568_v4 = vpack.c.bf16 %v1203_v1, %v1202_v63 }
 0x265   :  { %1589 = vst [vmem:[%s2294_s5 + $0x78] sm:$0xff] %v1573_v3  }
 0x266   :  { %1588 = vst [vmem:[%s2294_s5 + $0x70] sm:$0xff] %v1568_v4  }
 0x267   :  { %1370 = vsyncpa [#allocation4], 1 }
 0x268   :  { %1371 = vsyncpa [#allocation6], 1 }

// kernel: fast_ppr_gcn_forward.3
= control target key start
LH: loop header
LB: loop body
LE: loop exit
PB: predicated region body
PF: predicated region fallthrough
CT: control target
= control target key end

     0   :  { %v1803_v56 = vmov 0   ;;  %s2219_s1 = inlined_call_operand.vmem [shape: bf16[256,128], index: 1, kind: input, shape index: {}]   ;;  %s2220_s0 = inlined_call_operand.vmem [shape: bf16[256,256], index: 0, kind: input, shape index: {}]   ;;  %s2221_s2 = inlined_call_operand.vmem [shape: bf16[128,128], index: 2, kind: input, shape index: {}]   ;;  %s2222_s4 = inlined_call_operand.vmem [shape: f32[256,1], index: 4, kind: input, shape index: {}]   ;;  %s2223_s3 = inlined_call_operand.vmem [shape: f32[1,128], index: 3, kind: input, shape index: {}]   ;;  %s2224_s5 = inlined_call_operand.vmem [shape: bf16[256,128], index: 5, kind: output, shape index: {}]  }
   0x1   :  { %v1731_v0 = vld [vmem:[%s2219_s1 + $0x40] sm:$0xff]   ;;  %v1733_v2 = vld [vmem:[%s2219_s1 + $0x48] sm:$0xff]   ;;  %v1735_v4 = vld [vmem:[%s2219_s1 + $0x50] sm:$0xff]   ;;  %1730 = vset.pattern.permute.xlu1 %v1803_v56  ;;  %1729 = vset.pattern.permute.xlu0 %v1803_v56 }
   0x2   :  { %v1732_v1 = vld [vmem:[%s2219_s1] sm:$0xff]   ;;  %1528 = vmatprep.subr.bf16.mxu0 %v1731_v0  ;;  %1712 = vmatprep.subr.bf16.mxu1 %v1731_v0  ;;  %v1734_v3 = vld [vmem:[%s2219_s1 + $0x8] sm:$0xff]   ;;  %v1736_v5 = vld [vmem:[%s2219_s1 + $0x10] sm:$0xff]  }
   0x3   :  { %1529 = vmatpush3.bf16.msra.mxu0 %v1732_v1  ;;  %1720 = vmatpush3.bf16.msra.mxu1 %v1732_v1  ;;  %v1737_v6 = vld [vmem:[%s2219_s1 + $0x58] sm:$0xff]   ;;  %v1739_v8 = vld [vmem:[%s2219_s1 + $0x60] sm:$0xff]   ;;  %v1741_v10 = vld [vmem:[%s2219_s1 + $0x68] sm:$0xff]  }
   0x4   :  { %1530 = vmatprep.subr.bf16.mxu0 %v1733_v2  ;;  %1713 = vmatprep.subr.bf16.mxu1 %v1733_v2  ;;  %v1738_v7 = vld [vmem:[%s2219_s1 + $0x18] sm:$0xff]   ;;  %v1740_v9 = vld [vmem:[%s2219_s1 + $0x20] sm:$0xff]   ;;  %v1742_v12 = vld [vmem:[%s2219_s1 + $0x28] sm:$0xff]  }
   0x5   :  { %v1749_v11 = vld [vmem:[%s2220_s0 + $0x4] ss:$8 sps:$4 sm:$0xff]   ;;  %v1743_v13 = vld [vmem:[%s2219_s1 + $0x70] sm:$0xff]   ;;  %v1745_v15 = vld [vmem:[%s2219_s1 + $0x78] sm:$0xff]  }
   0x6   :  { %446 = vmatprep.mubr.bf16.mxu0 %v1749_v11  ;;  %v1744_v14 = vld [vmem:[%s2219_s1 + $0x30] sm:$0xff]   ;;  %v1746_v16 = vld [vmem:[%s2219_s1 + $0x38] sm:$0xff]   ;;  %v1747_v17 = vld [vmem:[%s2220_s0] ss:$8 sps:$4 sm:$0xff]  }
   0x7   :  { %1531 = vmatpush3.bf16.msra.mxu0 %v1734_v3  ;;  %1721 = vmatpush3.bf16.msra.mxu1 %v1734_v3  ;;  %v1779_v18 = vld [vmem:[%s2220_s0 + $0xc4] ss:$8 sps:$4 sm:$0xff]   ;;  %v1750_v19 = vld [vmem:[%s2220_s0 + $0x14] ss:$8 sps:$4 sm:$0xff]   ;;  %v1777_v20 = vld [vmem:[%s2220_s0 + $0xc0] ss:$8 sps:$4 sm:$0xff]  }
   0x8   :  { %1532 = vmatprep.subr.bf16.mxu0 %v1735_v4  ;;  %1714 = vmatprep.subr.bf16.mxu1 %v1735_v4  ;;  %v1783_v21 = vld [vmem:[%s2220_s0 + $0xd4] ss:$8 sps:$4 sm:$0xff]   ;;  %v1752_v22 = vld [vmem:[%s2220_s0 + $0x10] ss:$8 sps:$4 sm:$0xff]   ;;  %v1753_v23 = vld [vmem:[%s2220_s0 + $0x24] ss:$8 sps:$4 sm:$0xff]  }
   0x9   :  { %542 = vmatprep.mubr.bf16.mxu1 %v1779_v18  ;;  %v1785_v24 = vld [vmem:[%s2220_s0 + $0xd0] ss:$8 sps:$4 sm:$0xff]   ;;  %v1795_v25 = vld [vmem:[%s2221_s2] sm:$0xff]   ;;  %v1796_v26 = vld [vmem:[%s2221_s2 + $0x8] sm:$0xff]  }
   0xa   :  { %v1789_v27 = vld [vmem:[%s2220_s0 + $0xe4] ss:$8 sps:$4 sm:$0xff]   ;;  %v1797_v28 = vld [vmem:[%s2221_s2 + $0x10] sm:$0xff]   ;;  %v1755_v29 = vld [vmem:[%s2220_s0 + $0x20] ss:$8 sps:$4 sm:$0xff]  }
   0xb   :  { %1533 = vmatpush3.bf16.msra.mxu0 %v1736_v5  ;;  %1722 = vmatpush3.bf16.msra.mxu1 %v1736_v5  ;;  %v1798_v30 = vld [vmem:[%s2221_s2 + $0x18] sm:$0xff]   ;;  %v1791_v32 = vld [vmem:[%s2220_s0 + $0xe0] ss:$8 sps:$4 sm:$0xff]   ;;  %v1759_v35 = vld [vmem:[%s2220_s0 + $0x44] ss:$8 sps:$4 sm:$0xff]  }
   0xc   :  { %1534 = vmatprep.subr.bf16.mxu0 %v1737_v6  ;;  %1715 = vmatprep.subr.bf16.mxu1 %v1737_v6  ;;  %v1756_v31 = vld [vmem:[%s2220_s0 + $0x34] ss:$8 sps:$4 sm:$0xff]   ;;  %v1758_v34 = vld [vmem:[%s2220_s0 + $0x30] ss:$8 sps:$4 sm:$0xff]   ;;  %v1761_v37 = vld [vmem:[%s2220_s0 + $0x40] ss:$8 sps:$4 sm:$0xff]  }
   0xd   :  { %v1792_v33 = vld [vmem:[%s2220_s0 + $0xf4] ss:$8 sps:$4 sm:$0xff]   ;;  %v1794_v36 = vld [vmem:[%s2220_s0 + $0xf0] ss:$8 sps:$4 sm:$0xff]   ;;  %v1765_v40 = vld [vmem:[%s2220_s0 + $0x64] ss:$8 sps:$4 sm:$0xff]  }
   0xe   :  { %v1762_v38 = vld [vmem:[%s2220_s0 + $0x54] ss:$8 sps:$4 sm:$0xff]   ;;  %v1764_v39 = vld [vmem:[%s2220_s0 + $0x50] ss:$8 sps:$4 sm:$0xff]   ;;  %v1767_v41 = vld [vmem:[%s2220_s0 + $0x60] ss:$8 sps:$4 sm:$0xff]  }
   0xf   :  { %1535 = vmatpush3.bf16.msra.mxu0 %v1738_v7  ;;  %1723 = vmatpush3.bf16.msra.mxu1 %v1738_v7  ;;  %v1768_v42 = vld [vmem:[%s2220_s0 + $0x74] ss:$8 sps:$4 sm:$0xff]   ;;  %v1770_v43 = vld [vmem:[%s2220_s0 + $0x70] ss:$8 sps:$4 sm:$0xff]   ;;  %v1771_v44 = vld [vmem:[%s2220_s0 + $0x84] ss:$8 sps:$4 sm:$0xff]  }
  0x10   :  { %1536 = vmatprep.subr.bf16.mxu0 %v1739_v8  ;;  %1716 = vmatprep.subr.bf16.mxu1 %v1739_v8  ;;  %v1773_v45 = vld [vmem:[%s2220_s0 + $0x80] ss:$8 sps:$4 sm:$0xff]   ;;  %v1774_v46 = vld [vmem:[%s2220_s0 + $0x94] ss:$8 sps:$4 sm:$0xff]   ;;  %v1776_v47 = vld [vmem:[%s2220_s0 + $0x90] ss:$8 sps:$4 sm:$0xff]  }
  0x11   :  { %v1780_v48 = vld [vmem:[%s2220_s0 + $0xa4] ss:$8 sps:$4 sm:$0xff]   ;;  %v1782_v49 = vld [vmem:[%s2220_s0 + $0xa0] ss:$8 sps:$4 sm:$0xff]   ;;  %v1786_v50 = vld [vmem:[%s2220_s0 + $0xb4] ss:$8 sps:$4 sm:$0xff]  }
  0x12   :  { %v1799_v51 = vld [vmem:[%s2221_s2 + $0x20] sm:$0xff]   ;;  %v1788_v52 = vld [vmem:[%s2220_s0 + $0xb0] ss:$8 sps:$4 sm:$0xff]   ;;  %v1800_v53 = vld [vmem:[%s2221_s2 + $0x28] sm:$0xff]  }
  0x13   :  { %1537 = vmatpush3.bf16.msra.mxu0 %v1740_v9  ;;  %1724 = vmatpush3.bf16.msra.mxu1 %v1740_v9  ;;  %v1801_v54 = vld [vmem:[%s2221_s2 + $0x30] sm:$0xff]   ;;  %v1802_v55 = vld [vmem:[%s2221_s2 + $0x38] sm:$0xff]   ;;  %v706_v58 = vld [vmem:[%s2222_s4] sm:$0xff] }
  0x14   :  { %1538 = vmatprep.subr.bf16.mxu0 %v1741_v10  ;;  %1717 = vmatprep.subr.bf16.mxu1 %v1741_v10  ;;  %v708_v57 = vld [vmem:[%s2222_s4 + $0x10] sm:$0xff]  ;;  %v709_v59 = vld [vmem:[%s2222_s4 + $0x18] sm:$0xff]  ;;  %v707_v60 = vld [vmem:[%s2222_s4 + $0x8] sm:$0xff] }
  0x15   :  { %751 = vperm.xlu1 %1730, %v708_v57   ;;  %741 = vperm.xlu0 %1729, %v706_v58   ;;  %v711_v61 = vld [vmem:[%s2222_s4 + $0x28] sm:$0xff]  ;;  %v710_v62 = vld [vmem:[%s2222_s4 + $0x20] sm:$0xff]  ;;  %v713_v63 = vld [vmem:[%s2222_s4 + $0x38] sm:$0xff] }
  0x16   :  { %v712_v0 = vld [vmem:[%s2222_s4 + $0x30] sm:$0xff]  ;;  %v715_v1 = vld [vmem:[%s2222_s4 + $0x48] sm:$0xff]  ;;  %v714_v2 = vld [vmem:[%s2222_s4 + $0x40] sm:$0xff] }
  0x17   :  { %1539 = vmatpush3.bf16.msra.mxu0 %v1742_v12  ;;  %1725 = vmatpush3.bf16.msra.mxu1 %v1742_v12  ;;  %v717_v3 = vld [vmem:[%s2222_s4 + $0x58] sm:$0xff]  ;;  %v716_v4 = vld [vmem:[%s2222_s4 + $0x50] sm:$0xff]  ;;  %v719_v5 = vld [vmem:[%s2222_s4 + $0x68] sm:$0xff] }
  0x18   :  { %1540 = vmatprep.subr.bf16.mxu0 %v1743_v13  ;;  %1718 = vmatprep.subr.bf16.mxu1 %v1743_v13  ;;  %v718_v6 = vld [vmem:[%s2222_s4 + $0x60] sm:$0xff]  ;;  %v721_v7 = vld [vmem:[%s2222_s4 + $0x78] sm:$0xff]  ;;  %v720_v8 = vld [vmem:[%s2222_s4 + $0x70] sm:$0xff] }
  0x19   :  { %756 = vperm.xlu1 %1730, %v709_v59   ;;  %746 = vperm.xlu0 %1729, %v707_v60   ;;  %v723_v9 = vld [vmem:[%s2222_s4 + $0x88] sm:$0xff]  ;;  %v722_v10 = vld [vmem:[%s2222_s4 + $0x80] sm:$0xff]  ;;  %v725_v11 = vld [vmem:[%s2222_s4 + $0x98] sm:$0xff] }
  0x1a   :  { %v724_v12 = vld [vmem:[%s2222_s4 + $0x90] sm:$0xff]  ;;  %v727_v13 = vld [vmem:[%s2222_s4 + $0xa8] sm:$0xff]  ;;  %v730_v18 = vld [vmem:[%s2222_s4 + $0xc0] sm:$0xff] }
  0x1b   :  { %1541 = vmatpush3.bf16.msra.mxu0 %v1744_v14  ;;  %1726 = vmatpush3.bf16.msra.mxu1 %v1744_v14  ;;  %v726_v14 = vld [vmem:[%s2222_s4 + $0xa0] sm:$0xff] }
  0x1c   :  { %1542 = vmatprep.subr.bf16.mxu0 %v1745_v15  ;;  %1719 = vmatprep.subr.bf16.mxu1 %v1745_v15  ;;  %v729_v15 = vld [vmem:[%s2222_s4 + $0xb8] sm:$0xff] }
  0x1d   :  { %766 = vperm.xlu1 %1730, %v711_v61   ;;  %761 = vperm.xlu0 %1729, %v710_v62  }
  0x1f   :  { %1543 = vmatpush3.bf16.msra.mxu0 %v1746_v16  ;;  %1727 = vmatpush3.bf16.msra.mxu1 %v1746_v16  ;;  %v728_v16 = vld [vmem:[%s2222_s4 + $0xb0] sm:$0xff] }
  0x20   :  { %1664 = vmatprep.subr.bf16.mxu1 %v1795_v25 }
  0x21   :  { %776 = vperm.xlu1 %1730, %v713_v63   ;;  %771 = vperm.xlu0 %1729, %v712_v0  }
  0x22   :  { %447 = vmatmul.mubr.bf16.vlgmr.msra.gmra.mrb[0].mxu0 %v1747_v17  ;;  %543 = vmatmul.mubr.bf16.vlgmr.msra.gmra.mrb[0].mxu1 %v1777_v20  ;;  %v731_v17 = vld [vmem:[%s2222_s4 + $0xc8] sm:$0xff]  ;;  %v732_v20 = vld [vmem:[%s2222_s4 + $0xd0] sm:$0xff] }
  0x23   :  { %454 = vmatprep.mubr.bf16.mxu0 %v1750_v19  ;;  %550 = vmatprep.mubr.bf16.mxu1 %v1783_v21  ;;  %v733_v19 = vld [vmem:[%s2222_s4 + $0xd8] sm:$0xff] }
  0x24   :  { %1665 = vmatpush3.bf16.msra.mxu1 %v1795_v25 }
  0x25   :  { %1666 = vmatprep.subr.bf16.mxu1 %v1796_v26  ;;  %786 = vperm.xlu1 %1730, %v715_v1  }
  0x26   :  { %781 = vperm.xlu0 %1729, %v714_v2  }
  0x28   :  { %1667 = vmatpush3.bf16.msra.mxu1 %v1796_v26 }
  0x29   :  { %1668 = vmatprep.subr.bf16.mxu1 %v1797_v28  ;;  %796 = vperm.xlu1 %1730, %v717_v3  }
  0x2a   :  { %455 = vmatmul.mubr.bf16.gmra.mrb[4].mxu0 %v1752_v22  ;;  %551 = vmatmul.mubr.bf16.gmra.mrb[4].mxu1 %v1785_v24 }
  0x2b   :  { %462 = vmatprep.mubr.bf16.mxu0 %v1753_v23  ;;  %558 = vmatprep.mubr.bf16.mxu1 %v1789_v27  ;;  %v735_v27 = vld [vmem:[%s2222_s4 + $0xe8] sm:$0xff] }
  0x2c   :  { %1669 = vmatpush3.bf16.msra.mxu1 %v1797_v28  ;;  %791 = vperm.xlu0 %1729, %v716_v4   ;;  %v734_v28 = vld [vmem:[%s2222_s4 + $0xe0] sm:$0xff] }
  0x2d   :  { %1670 = vmatprep.subr.bf16.mxu1 %v1798_v30  ;;  %806 = vperm.xlu1 %1730, %v719_v5  }
  0x30   :  { %1671 = vmatpush3.bf16.msra.mxu1 %v1798_v30  ;;  %801 = vperm.xlu0 %1729, %v718_v6  }
  0x31   :  { %1672 = vmatprep.subr.bf16.mxu1 %v1799_v51  ;;  %816 = vperm.xlu1 %1730, %v721_v7  }
  0x32   :  { %463 = vmatmul.mubr.bf16.gmra.mrb[8].mxu0 %v1755_v29  ;;  %559 = vmatmul.mubr.bf16.gmra.mrb[8].mxu1 %v1791_v32 }
  0x33   :  { %470 = vmatprep.mubr.bf16.mxu0 %v1756_v31  ;;  %566 = vmatprep.mubr.bf16.mxu1 %v1792_v33 }
  0x34   :  { %1673 = vmatpush3.bf16.msra.mxu1 %v1799_v51  ;;  %811 = vperm.xlu0 %1729, %v720_v8  }
  0x35   :  { %1674 = vmatprep.subr.bf16.mxu1 %v1800_v53  ;;  %826 = vperm.xlu1 %1730, %v723_v9  }
  0x38   :  { %1675 = vmatpush3.bf16.msra.mxu1 %v1800_v53  ;;  %821 = vperm.xlu0 %1729, %v722_v10  }
  0x39   :  { %1676 = vmatprep.subr.bf16.mxu1 %v1801_v54  ;;  %836 = vperm.xlu1 %1730, %v725_v11  }
  0x3a   :  { %471 = vmatmul.mubr.bf16.gmra.mrb[12].mxu0 %v1758_v34  ;;  %567 = vmatmul.mubr.bf16.gmra.mrb[12].mxu1 %v1794_v36  ;;  %v737_v36 = vld [vmem:[%s2222_s4 + $0xf8] sm:$0xff] }
  0x3b   :  { %478 = vmatprep.mubr.bf16.mxu0 %v1759_v35 }
  0x3c   :  { %1677 = vmatpush3.bf16.msra.mxu1 %v1801_v54  ;;  %831 = vperm.xlu0 %1729, %v724_v12  }
  0x3d   :  { %1678 = vmatprep.subr.bf16.mxu1 %v1802_v55  ;;  %846 = vperm.xlu1 %1730, %v727_v13  }
  0x40   :  { %1679 = vmatpush3.bf16.msra.mxu1 %v1802_v55  ;;  %841 = vperm.xlu0 %1729, %v726_v14  }
  0x41   :  { %856 = vperm.xlu1 %1730, %v729_v15  }
  0x42   :  { %479 = vmatmul.mubr.bf16.gmra.mrb[16].mxu0 %v1761_v37  ;;  %v736_v37 = vld [vmem:[%s2222_s4 + $0xf0] sm:$0xff] }
  0x43   :  { %486 = vmatprep.mubr.bf16.mxu0 %v1762_v38 }
  0x44   :  { %851 = vperm.xlu0 %1729, %v728_v16  }
  0x45   :  { %866 = vperm.xlu1 %1730, %v731_v17  }
  0x48   :  { %861 = vperm.xlu0 %1729, %v730_v18  }
  0x49   :  { %876 = vperm.xlu1 %1730, %v733_v19  }
  0x4a   :  { %487 = vmatmul.mubr.bf16.gmra.mrb[20].mxu0 %v1764_v39 }
  0x4b   :  { %494 = vmatprep.mubr.bf16.mxu0 %v1765_v40 }
  0x4c   :  { %871 = vperm.xlu0 %1729, %v732_v20  }
  0x4d   :  { %886 = vperm.xlu1 %1730, %v735_v27  }
  0x50   :  { %881 = vperm.xlu0 %1729, %v734_v28  }
  0x51   :  { %896 = vperm.xlu1 %1730, %v737_v36  }
  0x52   :  { %495 = vmatmul.mubr.bf16.gmra.mrb[24].mxu0 %v1767_v41 }
  0x53   :  { %502 = vmatprep.mubr.bf16.mxu0 %v1768_v42 }
  0x54   :  { %891 = vperm.xlu0 %1729, %v736_v37  }
  0x5a   :  { %503 = vmatmul.mubr.bf16.gmra.mrb[28].mxu0 %v1770_v43 }
  0x5b   :  { %510 = vmatprep.mubr.bf16.mxu0 %v1771_v44 }
  0x62   :  { %511 = vmatmul.mubr.bf16.gmra.mrb[32].mxu0 %v1773_v45 }
  0x63   :  { %518 = vmatprep.mubr.bf16.mxu0 %v1774_v46 }
  0x6a   :  { %519 = vmatmul.mubr.bf16.gmra.mrb[36].mxu0 %v1776_v47 }
  0x6b   :  { %526 = vmatprep.mubr.bf16.mxu0 %v1780_v48 }
  0x72   :  { %527 = vmatmul.mubr.bf16.gmra.mrb[40].mxu0 %v1782_v49 }
  0x73   :  { %534 = vmatprep.mubr.bf16.mxu0 %v1786_v50 }
  0x7a   :  { %535 = vmatmul.mubr.bf16.gmra.mrb[44].mxu0 %v1788_v52 }
  0xf5   :  { %v1544_v21 = vpop.f32.mrb[0].mxu0  ;;  %v1616_v23 = vpop.f32.mrb[0].mxu1 }
  0xf6   :  { %v1545_v22 = vpop.f32.mrb[1].mxu0  ;;  %v1617_v26 = vpop.f32.mrb[1].mxu1 }
  0xf7   :  { %v1546_v24 = vadd.f32 %v1545_v22, %v1544_v21  ;;  %v1547_v25 = vpop.f32.mrb[2].mxu0  ;;  %v2092_v30 = vadd.f32 %v1617_v26, %v1616_v23  ;;  %v1619_v31 = vpop.f32.mrb[2].mxu1 }
  0xf8   :  { %v1548_v29 = vpop.f32.mrb[3].mxu0  ;;  %v1620_v33 = vpop.f32.mrb[3].mxu1 }
  0xf9   :  { %v1549_v32 = vadd.f32 %v1548_v29, %v1547_v25  ;;  %v2094_v34 = vadd.f32 %v1620_v33, %v1619_v31 }
  0xfb   :  { %v674_v35 = vpack.c.bf16 %v1549_v32, %v1546_v24  ;;  %v686_v38 = vpack.c.bf16 %v2094_v34, %v2092_v30 }
  0xfd   :  { %v1550_v39 = vpop.f32.mrb[4].mxu0  ;;  %1680 = vmatprep.mubr.bf16.mxu1 %v674_v35  ;;  %v1622_v41 = vpop.f32.mrb[4].mxu1 }
  0xfe   :  { %v1551_v40 = vpop.f32.mrb[5].mxu0  ;;  %v1623_v44 = vpop.f32.mrb[5].mxu1 }
  0xff   :  { %v1552_v42 = vadd.f32 %v1551_v40, %v1550_v39  ;;  %v1553_v43 = vpop.f32.mrb[6].mxu0  ;;  %v2104_v46 = vadd.f32 %v1623_v44, %v1622_v41  ;;  %v1625_v47 = vpop.f32.mrb[6].mxu1 }
 0x100   :  { %v1554_v45 = vpop.f32.mrb[7].mxu0  ;;  %v1626_v49 = vpop.f32.mrb[7].mxu1 }
 0x101   :  { %v1555_v48 = vadd.f32 %v1554_v45, %v1553_v43  ;;  %v2106_v50 = vadd.f32 %v1626_v49, %v1625_v47 }
 0x103   :  { %v675_v51 = vpack.c.bf16 %v1555_v48, %v1552_v42  ;;  %v687_v52 = vpack.c.bf16 %v2106_v50, %v2104_v46 }
 0x105   :  { %v1556_v53 = vpop.f32.mrb[8].mxu0  ;;  %1681 = vmatmul.mubr.bf16.vlgmr.msra.gmra.mrb[16].mxu1 %v675_v51  ;;  %v1628_v55 = vpop.f32.mrb[8].mxu1 }
 0x106   :  { %v1557_v54 = vpop.f32.mrb[9].mxu0  ;;  %v1629_v58 = vpop.f32.mrb[9].mxu1 }
 0x107   :  { %v1558_v56 = vadd.f32 %v1557_v54, %v1556_v53  ;;  %v1559_v57 = vpop.f32.mrb[10].mxu0  ;;  %v2110_v60 = vadd.f32 %v1629_v58, %v1628_v55  ;;  %v1631_v61 = vpop.f32.mrb[10].mxu1 }
 0x108   :  { %v1560_v59 = vpop.f32.mrb[11].mxu0  ;;  %v1632_v63 = vpop.f32.mrb[11].mxu1 }
 0x109   :  { %v1561_v62 = vadd.f32 %v1560_v59, %v1559_v57  ;;  %v2112_v0 = vadd.f32 %v1632_v63, %v1631_v61 }
 0x10b   :  { %v676_v1 = vpack.c.bf16 %v1561_v62, %v1558_v56  ;;  %v688_v2 = vpack.c.bf16 %v2112_v0, %v2110_v60 }
 0x10d   :  { %v1562_v3 = vpop.f32.mrb[12].mxu0  ;;  %1684 = vmatprep.mubr.bf16.mxu1 %v676_v1  ;;  %v1634_v5 = vpop.f32.mrb[12].mxu1 }
 0x10e   :  { %v1563_v4 = vpop.f32.mrb[13].mxu0  ;;  %v1635_v8 = vpop.f32.mrb[13].mxu1 }
 0x10f   :  { %v1564_v6 = vadd.f32 %v1563_v4, %v1562_v3  ;;  %v1565_v7 = vpop.f32.mrb[14].mxu0  ;;  %v2116_v10 = vadd.f32 %v1635_v8, %v1634_v5  ;;  %v1637_v11 = vpop.f32.mrb[14].mxu1 }
 0x110   :  { %v1566_v9 = vpop.f32.mrb[15].mxu0  ;;  %v1638_v13 = vpop.f32.mrb[15].mxu1 }
 0x111   :  { %v1567_v12 = vadd.f32 %v1566_v9, %v1565_v7  ;;  %v2118_v14 = vadd.f32 %v1638_v13, %v1637_v11 }
 0x113   :  { %v677_v15 = vpack.c.bf16 %v1567_v12, %v1564_v6  ;;  %v689_v16 = vpack.c.bf16 %v2118_v14, %v2116_v10 }
 0x115   :  { %v1568_v17 = vpop.f32.mrb[16].mxu0  ;;  %1685 = vmatmul.mubr.bf16.gmra.mrb[20].mxu1 %v677_v15 }
 0x116   :  { %v1569_v18 = vpop.f32.mrb[17].mxu0 }
 0x117   :  { %v1570_v19 = vadd.f32 %v1569_v18, %v1568_v17  ;;  %v1571_v20 = vpop.f32.mrb[18].mxu0 }
 0x118   :  { %v1572_v21 = vpop.f32.mrb[19].mxu0 }
 0x119   :  { %v1573_v22 = vadd.f32 %v1572_v21, %v1571_v20  ;;  %v752_v21 = vpop.permute.xlu1 %751 }
 0x11b   :  { %v678_v23 = vpack.c.bf16 %v1573_v22, %v1570_v19  ;;  %v742_v22 = vpop.permute.xlu0 %741 }
 0x11d   :  { %v1574_v24 = vpop.f32.mrb[20].mxu0  ;;  %1688 = vmatprep.mubr.bf16.mxu1 %v678_v23  ;;  %v2137_v23 = vld [vmem:[%s2223_s3] ss:$0 sm:$0xff]  ;;  %v757_v30 = vpop.permute.xlu1 %756 }
 0x11e   :  { %v1575_v25 = vpop.f32.mrb[21].mxu0  ;;  %v907_v34 = vmul.f32 %v2137_v23, %v752_v21  ;;  %v905_v50 = vmul.f32 %v2137_v23, %v742_v22 }
 0x11f   :  { %v1576_v26 = vadd.f32 %v1575_v25, %v1574_v24  ;;  %v1577_v27 = vpop.f32.mrb[22].mxu0  ;;  %v747_v46 = vpop.permute.xlu0 %746 }
 0x120   :  { %v1578_v28 = vpop.f32.mrb[23].mxu0 }
 0x121   :  { %v1579_v29 = vadd.f32 %v1578_v28, %v1577_v27  ;;  %v767_v28 = vpop.permute.xlu1 %766 }
 0x123   :  { %v679_v31 = vpack.c.bf16 %v1579_v29, %v1576_v26  ;;  %v762_v29 = vpop.permute.xlu0 %761 }
 0x125   :  { %v1580_v32 = vpop.f32.mrb[24].mxu0  ;;  %1689 = vmatmul.mubr.bf16.gmra.mrb[24].mxu1 %v679_v31  ;;  %v777_v31 = vpop.permute.xlu1 %776 }
 0x126   :  { %v1581_v33 = vpop.f32.mrb[25].mxu0 }
 0x127   :  { %v1582_v35 = vadd.f32 %v1581_v33, %v1580_v32  ;;  %v1583_v36 = vpop.f32.mrb[26].mxu0  ;;  %v772_v32 = vpop.permute.xlu0 %771  ;;  %v912_v33 = vmul.f32 %v2137_v23, %v777_v31 }
 0x128   :  { %v1584_v37 = vpop.f32.mrb[27].mxu0 }
 0x129   :  { %v1585_v39 = vadd.f32 %v1584_v37, %v1583_v36  ;;  %v910_v36 = vmul.f32 %v2137_v23, %v767_v28  ;;  %v909_v37 = vmul.f32 %v2137_v23, %v762_v29 }
 0x12b   :  { %v680_v40 = vpack.c.bf16 %v1585_v39, %v1582_v35  ;;  %v911_v35 = vmul.f32 %v2137_v23, %v772_v32 }
 0x12d   :  { %v1586_v41 = vpop.f32.mrb[28].mxu0  ;;  %1692 = vmatprep.mubr.bf16.mxu1 %v680_v40 }
 0x12e   :  { %v1587_v42 = vpop.f32.mrb[29].mxu0 }
 0x12f   :  { %v1588_v43 = vadd.f32 %v1587_v42, %v1586_v41  ;;  %v1589_v44 = vpop.f32.mrb[30].mxu0 }
 0x130   :  { %v1590_v45 = vpop.f32.mrb[31].mxu0 }
 0x131   :  { %v1591_v47 = vadd.f32 %v1590_v45, %v1589_v44 }
 0x133   :  { %v681_v48 = vpack.c.bf16 %v1591_v47, %v1588_v43 }
 0x135   :  { %v1592_v49 = vpop.f32.mrb[32].mxu0  ;;  %1693 = vmatmul.mubr.bf16.gmra.mrb[28].mxu1 %v681_v48 }
 0x136   :  { %v1593_v51 = vpop.f32.mrb[33].mxu0 }
 0x137   :  { %v1594_v53 = vadd.f32 %v1593_v51, %v1592_v49  ;;  %v1595_v54 = vpop.f32.mrb[34].mxu0  ;;  %v787_v51 = vpop.permute.xlu1 %786 }
 0x138   :  { %v1596_v55 = vpop.f32.mrb[35].mxu0 }
 0x139   :  { %v1597_v56 = vadd.f32 %v1596_v55, %v1595_v54 }
 0x13b   :  { %v682_v57 = vpack.c.bf16 %v1597_v56, %v1594_v53  ;;  %v782_v53 = vpop.permute.xlu0 %781  ;;  %v797_v54 = vpop.permute.xlu1 %796 }
 0x13c   :  { %v916_v56 = vmul.f32 %v2137_v23, %v797_v54 }
 0x13d   :  { %v1598_v58 = vpop.f32.mrb[36].mxu0  ;;  %1696 = vmatprep.mubr.bf16.mxu1 %v682_v57 }
 0x13e   :  { %v1599_v59 = vpop.f32.mrb[37].mxu0 }
 0x13f   :  { %v1600_v61 = vadd.f32 %v1599_v59, %v1598_v58  ;;  %v1601_v62 = vpop.f32.mrb[38].mxu0  ;;  %v792_v55 = vpop.permute.xlu0 %791  ;;  %v914_v58 = vmul.f32 %v2137_v23, %v787_v51  ;;  %v913_v59 = vmul.f32 %v2137_v23, %v782_v53 }
 0x140   :  { %v1602_v63 = vpop.f32.mrb[39].mxu0  ;;  %v915_v57 = vmul.f32 %v2137_v23, %v792_v55 }
 0x141   :  { %v1603_v1 = vadd.f32 %v1602_v63, %v1601_v62 }
 0x143   :  { %v683_v3 = vpack.c.bf16 %v1603_v1, %v1600_v61 }
 0x145   :  { %v1604_v4 = vpop.f32.mrb[40].mxu0  ;;  %1697 = vmatmul.mubr.bf16.gmra.mrb[32].mxu1 %v683_v3 }
 0x146   :  { %v1605_v5 = vpop.f32.mrb[41].mxu0 }
 0x147   :  { %v1606_v6 = vadd.f32 %v1605_v5, %v1604_v4  ;;  %v1607_v7 = vpop.f32.mrb[42].mxu0 }
 0x148   :  { %v1608_v8 = vpop.f32.mrb[43].mxu0 }
 0x149   :  { %v1609_v9 = vadd.f32 %v1608_v8, %v1607_v7  ;;  %v802_v8 = vpop.permute.xlu0 %801 }
 0x14a   :  { %v917_v21 = vmul.f32 %v2137_v23, %v802_v8 }
 0x14b   :  { %v684_v11 = vpack.c.bf16 %v1609_v9, %v1606_v6 }
 0x14d   :  { %v1610_v12 = vpop.f32.mrb[44].mxu0  ;;  %1700 = vmatprep.mubr.bf16.mxu1 %v684_v11  ;;  %v807_v11 = vpop.permute.xlu1 %806 }
 0x14e   :  { %v1611_v13 = vpop.f32.mrb[45].mxu0 }
 0x14f   :  { %v1612_v15 = vadd.f32 %v1611_v13, %v1610_v12  ;;  %v1613_v17 = vpop.f32.mrb[46].mxu0  ;;  %v812_v12 = vpop.permute.xlu0 %811 }
 0x150   :  { %v1614_v18 = vpop.f32.mrb[47].mxu0 }
 0x151   :  { %v1615_v19 = vadd.f32 %v1614_v18, %v1613_v17  ;;  %v817_v13 = vpop.permute.xlu1 %816  ;;  %v919_v18 = vmul.f32 %v2137_v23, %v812_v12 }
 0x152   :  { %v920_v17 = vmul.f32 %v2137_v23, %v817_v13 }
 0x153   :  { %v685_v20 = vpack.c.bf16 %v1615_v19, %v1612_v15  ;;  %v822_v22 = vpop.permute.xlu0 %821 }
 0x155   :  { %1701 = vmatmul.mubr.bf16.gmra.mrb[36].mxu1 %v685_v20  ;;  %v918_v20 = vmul.f32 %v2137_v23, %v807_v11 }
 0x156   :  { %1704 = vmatprep.mubr.bf16.mxu1 %v686_v38  ;;  %v908_v38 = vmul.f32 %v2137_v23, %v757_v30 }
 0x15d   :  { %1705 = vmatmul.mubr.bf16.gmra.mrb[40].mxu1 %v687_v52  ;;  %v906_v52 = vmul.f32 %v2137_v23, %v747_v46 }
 0x15e   :  { %1708 = vmatprep.mubr.bf16.mxu1 %v688_v2 }
 0x165   :  { %1709 = vmatmul.mubr.bf16.gmra.mrb[44].mxu1 %v689_v16 }
 0x1d8   :  { %v1682_v60 = vpop.f32.mrb[16].mxu1 }
 0x1d9   :  { %v1019_v0 = vpop.f32.mrb[17].mxu1  ;;  %v1028_v10 = vadd.f32 %v1682_v60, %v907_v34 }
 0x1da   :  { %v1683_v2 = vpop.f32.mrb[18].mxu1  ;;  %v1020_v24 = vadd.f32 %v1019_v0, %v905_v50  ;;  %v827_v50 = vpop.permute.xlu1 %826 }
 0x1db   :  { %v1031_v14 = vadd.f32 %v1683_v2, %v908_v38  ;;  %v1022_v16 = vpop.f32.mrb[19].mxu1  ;;  %v922_v32 = vmul.f32 %v2137_v23, %v827_v50 }
 0x1dc   :  { %v1023_v25 = vadd.f32 %v1022_v16, %v906_v52 }
 0x1dd   :  { %v1441_v26 = vpack.c.bf16 %v1031_v14, %v1028_v10  ;;  %v832_v10 = vpop.permute.xlu0 %831 }
 0x1de   :  { %v1436_v27 = vpack.c.bf16 %v1023_v25, %v1020_v24  ;;  %v837_v14 = vpop.permute.xlu1 %836  ;;  %v923_v24 = vmul.f32 %v2137_v23, %v832_v10  ;;  %v921_v25 = vmul.f32 %v2137_v23, %v822_v22 }
 0x1df   :  { %1513 = vst [vmem:[%s2224_s5 + $0x8] sm:$0xff] %v1441_v26   ;;  %v924_v28 = vmul.f32 %v2137_v23, %v837_v14 }
 0x1e0   :  { %1437 = vst [vmem:[%s2224_s5] sm:$0xff] %v1436_v27  }
 0x1e1   :  { %v842_v16 = vpop.permute.xlu0 %841 }
 0x1e2   :  { %v847_v26 = vpop.permute.xlu1 %846 }
 0x1e8   :  { %v1686_v39 = vpop.f32.mrb[20].mxu1 }
 0x1e9   :  { %v1035_v40 = vpop.f32.mrb[21].mxu1  ;;  %v1044_v42 = vadd.f32 %v1686_v39, %v911_v35  ;;  %v852_v39 = vpop.permute.xlu0 %851 }
 0x1ea   :  { %v1687_v41 = vpop.f32.mrb[22].mxu1  ;;  %v1036_v45 = vadd.f32 %v1035_v40, %v909_v37 }
 0x1eb   :  { %v1047_v43 = vadd.f32 %v1687_v41, %v912_v33  ;;  %v1038_v44 = vpop.f32.mrb[23].mxu1 }
 0x1ec   :  { %v1039_v47 = vadd.f32 %v1038_v44, %v910_v36 }
 0x1ed   :  { %v1451_v48 = vpack.c.bf16 %v1047_v43, %v1044_v42  ;;  %v857_v42 = vpop.permute.xlu1 %856  ;;  %v862_v44 = vpop.permute.xlu0 %861 }
 0x1ee   :  { %v1446_v49 = vpack.c.bf16 %v1039_v47, %v1036_v45  ;;  %v927_v47 = vmul.f32 %v2137_v23, %v852_v39  ;;  %v928_v53 = vmul.f32 %v2137_v23, %v857_v42 }
 0x1ef   :  { %1515 = vst [vmem:[%s2224_s5 + $0x18] sm:$0xff] %v1451_v48   ;;  %v925_v48 = vmul.f32 %v2137_v23, %v842_v16 }
 0x1f0   :  { %1514 = vst [vmem:[%s2224_s5 + $0x10] sm:$0xff] %v1446_v49  }
 0x1f1   :  { %v867_v45 = vpop.permute.xlu1 %866  ;;  %v872_v49 = vpop.permute.xlu0 %871 }
 0x1f2   :  { %v930_v13 = vmul.f32 %v2137_v23, %v867_v45 }
 0x1f8   :  { %v1690_v61 = vpop.f32.mrb[24].mxu1 }
 0x1f9   :  { %v1051_v62 = vpop.f32.mrb[25].mxu1  ;;  %v1060_v1 = vadd.f32 %v1690_v61, %v915_v57  ;;  %v877_v57 = vpop.permute.xlu1 %876 }
 0x1fa   :  { %v1691_v63 = vpop.f32.mrb[26].mxu1  ;;  %v1052_v5 = vadd.f32 %v1051_v62, %v913_v59 }
 0x1fb   :  { %v1063_v3 = vadd.f32 %v1691_v63, %v916_v56  ;;  %v1054_v4 = vpop.f32.mrb[27].mxu1  ;;  %v926_v56 = vmul.f32 %v2137_v23, %v847_v26 }
 0x1fc   :  { %v1055_v6 = vadd.f32 %v1054_v4, %v914_v58 }
 0x1fd   :  { %v1461_v7 = vpack.c.bf16 %v1063_v3, %v1060_v1  ;;  %v882_v3 = vpop.permute.xlu0 %881 }
 0x1fe   :  { %v1456_v9 = vpack.c.bf16 %v1055_v6, %v1052_v5  ;;  %v931_v5 = vmul.f32 %v2137_v23, %v872_v49  ;;  %v929_v6 = vmul.f32 %v2137_v23, %v862_v44 }
 0x1ff   :  { %1517 = vst [vmem:[%s2224_s5 + $0x28] sm:$0xff] %v1461_v7   ;;  %v887_v7 = vpop.permute.xlu1 %886 }
 0x200   :  { %1516 = vst [vmem:[%s2224_s5 + $0x20] sm:$0xff] %v1456_v9   ;;  %v932_v9 = vmul.f32 %v2137_v23, %v877_v57 }
 0x208   :  { %v1694_v15 = vpop.f32.mrb[28].mxu1 }
 0x209   :  { %v1067_v19 = vpop.f32.mrb[29].mxu1  ;;  %v1076_v34 = vadd.f32 %v1694_v15, %v919_v18 }
 0x20a   :  { %v1695_v30 = vpop.f32.mrb[30].mxu1  ;;  %v1068_v52 = vadd.f32 %v1067_v19, %v917_v21 }
 0x20b   :  { %v1079_v38 = vadd.f32 %v1695_v30, %v920_v17  ;;  %v1070_v46 = vpop.f32.mrb[31].mxu1  ;;  %v897_v30 = vpop.permute.xlu1 %896 }
 0x20c   :  { %v1071_v60 = vadd.f32 %v1070_v46, %v918_v20  ;;  %v892_v20 = vpop.permute.xlu0 %891  ;;  %v933_v46 = vmul.f32 %v2137_v23, %v882_v3 }
 0x20d   :  { %v1471_v0 = vpack.c.bf16 %v1079_v38, %v1076_v34  ;;  %v935_v38 = vmul.f32 %v2137_v23, %v892_v20 }
 0x20e   :  { %v1466_v2 = vpack.c.bf16 %v1071_v60, %v1068_v52  ;;  %v936_v52 = vmul.f32 %v2137_v23, %v897_v30 }
 0x20f   :  { %1519 = vst [vmem:[%s2224_s5 + $0x38] sm:$0xff] %v1471_v0  }
 0x210   :  { %1518 = vst [vmem:[%s2224_s5 + $0x30] sm:$0xff] %v1466_v2   ;;  %v934_v2 = vmul.f32 %v2137_v23, %v887_v7 }
 0x218   :  { %v1698_v27 = vpop.f32.mrb[32].mxu1 }
 0x219   :  { %v1092_v29 = vadd.f32 %v1698_v27, %v923_v24  ;;  %v1083_v31 = vpop.f32.mrb[33].mxu1 }
 0x21a   :  { %v1084_v33 = vadd.f32 %v1083_v31, %v921_v25  ;;  %v1699_v35 = vpop.f32.mrb[34].mxu1 }
 0x21b   :  { %v1095_v36 = vadd.f32 %v1699_v35, %v924_v28  ;;  %v1086_v37 = vpop.f32.mrb[35].mxu1 }
 0x21c   :  { %v1087_v40 = vadd.f32 %v1086_v37, %v922_v32 }
 0x21d   :  { %v1481_v41 = vpack.c.bf16 %v1095_v36, %v1092_v29 }
 0x21e   :  { %v1476_v43 = vpack.c.bf16 %v1087_v40, %v1084_v33 }
 0x21f   :  { %1521 = vst [vmem:[%s2224_s5 + $0x48] sm:$0xff] %v1481_v41  }
 0x220   :  { %1520 = vst [vmem:[%s2224_s5 + $0x40] sm:$0xff] %v1476_v43  }
 0x228   :  { %v1702_v51 = vpop.f32.mrb[36].mxu1 }
 0x229   :  { %v1108_v54 = vadd.f32 %v1702_v51, %v927_v47  ;;  %v1099_v55 = vpop.f32.mrb[37].mxu1 }
 0x22a   :  { %v1100_v58 = vadd.f32 %v1099_v55, %v925_v48  ;;  %v1703_v59 = vpop.f32.mrb[38].mxu1 }
 0x22b   :  { %v1111_v61 = vadd.f32 %v1703_v59, %v928_v53  ;;  %v1102_v62 = vpop.f32.mrb[39].mxu1 }
 0x22c   :  { %v1103_v63 = vadd.f32 %v1102_v62, %v926_v56 }
 0x22d   :  { %v1491_v1 = vpack.c.bf16 %v1111_v61, %v1108_v54 }
 0x22e   :  { %v1486_v4 = vpack.c.bf16 %v1103_v63, %v1100_v58 }
 0x22f   :  { %1523 = vst [vmem:[%s2224_s5 + $0x58] sm:$0xff] %v1491_v1  }
 0x230   :  { %1522 = vst [vmem:[%s2224_s5 + $0x50] sm:$0xff] %v1486_v4   ;;  %v1706_v8 = vpop.f32.mrb[40].mxu1 }
 0x231   :  { %v1124_v11 = vadd.f32 %v1706_v8, %v931_v5  ;;  %v1115_v12 = vpop.f32.mrb[41].mxu1 }
 0x232   :  { %v1116_v15 = vadd.f32 %v1115_v12, %v929_v6  ;;  %v1707_v17 = vpop.f32.mrb[42].mxu1 }
 0x233   :  { %v1127_v18 = vadd.f32 %v1707_v17, %v932_v9  ;;  %v1118_v19 = vpop.f32.mrb[43].mxu1 }
 0x234   :  { %v1119_v21 = vadd.f32 %v1118_v19, %v930_v13 }
 0x235   :  { %v1501_v22 = vpack.c.bf16 %v1127_v18, %v1124_v11 }
 0x236   :  { %v1496_v34 = vpack.c.bf16 %v1119_v21, %v1116_v15 }
 0x237   :  { %1525 = vst [vmem:[%s2224_s5 + $0x68] sm:$0xff] %v1501_v22  }
 0x238   :  { %1524 = vst [vmem:[%s2224_s5 + $0x60] sm:$0xff] %v1496_v34   ;;  %v1710_v50 = vpop.f32.mrb[44].mxu1 }
 0x239   :  { %v1140_v60 = vadd.f32 %v1710_v50, %v935_v38  ;;  %v1131_v0 = vpop.f32.mrb[45].mxu1 }
 0x23a   :  { %v1132_v10 = vadd.f32 %v1131_v0, %v933_v46  ;;  %v1711_v14 = vpop.f32.mrb[46].mxu1 }
 0x23b   :  { %v1143_v16 = vadd.f32 %v1711_v14, %v936_v52  ;;  %v1134_v24 = vpop.f32.mrb[47].mxu1 }
 0x23c   :  { %v1135_v25 = vadd.f32 %v1134_v24, %v934_v2 }
 0x23d   :  { %v1511_v26 = vpack.c.bf16 %v1143_v16, %v1140_v60 }
 0x23e   :  { %v1506_v27 = vpack.c.bf16 %v1135_v25, %v1132_v10 }
 0x23f   :  { %1527 = vst [vmem:[%s2224_s5 + $0x78] sm:$0xff] %v1511_v26  }
 0x240   :  { %1526 = vst [vmem:[%s2224_s5 + $0x70] sm:$0xff] %v1506_v27  }

</bundles_post_ra>
